<compile_context>
chip_gen: v7x
topology: tpu7x:2x2x1
jax: 0.10.0
libtpu: 0.0.40
codegen_flags: <defaults>
</compile_context>

<pallas_src>
import math

import jax
import jax.numpy as jnp
import numpy as np
from jax.experimental import pallas as pl
from jax.experimental.pallas import tpu as pltpu

F32 = jnp.float32
BN_EPS = 1e-5
_BNS = 1.0 / math.sqrt(1.0 + BN_EPS)   # inference BatchNorm (running stats 0/1)


# ----------------------------------------------------------------------------
# in-kernel helpers (traced inside the single fused kernel)
# ----------------------------------------------------------------------------
def _mm(a, b):
    return jnp.dot(a, b, preferred_element_type=jnp.float32)


def _relu(x):
    return jnp.maximum(x, 0.0)


def _block_forward(x_feat, y_feat, p):
    """Block(x, y): EfficientAttention + CAM over the stacked pair, averaged.

    Layout: channel-last; the torch (2, C, 1, N) tensor is handled as two
    (N, C) matrices.  Returns the (N, C) block output (== torch result .T).
    """
    (kqv_w, kqv_b, r_w, r_b, head_mask,
     pool_w1, pool_w2, adapt_w1, adapt_w2, dg_w1, dg_w2) = p
    pair = (x_feat, y_feat)
    L, _ = x_feat.shape
    kc = r_w.shape[0]          # key_channels == value_channels == C // 2
    inf = pool_w2.shape[1]     # in_features  == C // 2

    # ---------------- EfficientAttention ----------------
    ea_acc = None
    for inp_b in pair:
        kqv = _mm(inp_b, kqv_w) + kqv_b                       # (L, 3*kc)
        k = kqv[:, :kc]
        q = kqv[:, kc:2 * kc]
        v = kqv[:, 2 * kc:]
        # keys: softmax over the spatial axis (torch dim=2)
        ke = jnp.exp(k - jnp.max(k, axis=0, keepdims=True))
        key_sm = ke / jnp.sum(ke, axis=0, keepdims=True)
        # queries: per-head softmax over channels (torch dim=1); grouped
        # denominator via the block-diagonal head mask (row max is constant
        # within each group, so subtracting it is valid).
        qe = jnp.exp(q - jnp.max(q, axis=1, keepdims=True))
        q_sm = qe / _mm(qe, head_mask)
        # per-head context / attended values as masked full matmuls
        ctx = _mm(key_sm.T, v) * head_mask                    # (kc, vc) block-diag
        att = _mm(q_sm, ctx)                                  # (L, vc)
        rep = _mm(att, r_w) + r_b + inp_b                     # reprojection + residual
        ea_acc = rep if ea_acc is None else ea_acc + rep
    ea_out = ea_acc * 0.5                                     # (L, C)

    # ---------------- CAM ----------------
    # pool path: AdaptiveAvgPool2d(1) + conv/BN stack (both stacked samples)
    pooled = jnp.concatenate(
        [jnp.mean(x_feat, axis=0, keepdims=True),
         jnp.mean(y_feat, axis=0, keepdims=True)], axis=0)     # (2, C)
    hs = _mm(_mm(pooled, pool_w1) * _BNS, pool_w2) * _BNS      # (2, inf)

    # delta_gen input is concat([low, hs_up], channels); split its first conv
    # weight so no lane concat / explicit broadcast is needed.
    dg_lo = dg_w1[:inf, :]
    dg_hi = dg_w1[inf:, :]
    d_hi = _mm(hs, dg_hi)                                      # (2, inf)

    # grid x coordinate: linspace(-1, 1, L); grid y is -1 (single row).
    xc = (jax.lax.broadcasted_iota(jnp.int32, (L, 1), 0).astype(jnp.float32)
          * (2.0 / (L - 1)) - 1.0)

    high_acc = None
    low_acc = None
    for b, inp_b in enumerate(pair):
        low = _mm(_mm(inp_b, adapt_w1) * _BNS, adapt_w2) * _BNS           # (L, inf)
        delta = _mm((_mm(low, dg_lo) + d_hi[b:b + 1, :]) * _BNS, dg_w2)   # (L, 2)
        # F.grid_sample of a 1x1 source, align_corners=False, zero padding:
        # weight = relu(1 - |gx|/2) * relu(1 - |gy|/2)
        gx = xc + delta[:, 0:1]
        gy = delta[:, 1:2] - 1.0
        w = _relu(1.0 - jnp.abs(gx) * 0.5) * _relu(1.0 - jnp.abs(gy) * 0.5)
        hi = w * hs[b:b + 1, :]                                           # (L, inf)
        high_acc = hi if high_acc is None else high_acc + hi
        low_acc = low if low_acc is None else low_acc + low
    cam_out = jnp.concatenate([high_acc, low_acc], axis=1) * 0.5          # (L, C)

    return (ea_out + cam_out) * 0.5


# ----------------------------------------------------------------------------
# the single fused kernel
# ----------------------------------------------------------------------------
def _ae_kernel(*refs):
    pi_ref, m_ref, th_ref = refs[-3:]
    vals = [r[...] for r in refs[:-3]]
    (x, A, Bm, adj1, adj2,
     iw, ib, ew, eb, dw, db, ow, ob) = vals[:13]
    blk1 = vals[13:24]
    blk2 = vals[24:35]
    dim = pi_ref.shape[1]

    # MultiplyLayer — TODO(synk): definition not in source; assumed relu(A@x@B).
    xe = _relu(_mm(_mm(A, x), Bm))

    # GaussianNoise is identity at inference.
    enc1 = _relu(_mm(xe, iw) + ib) * _BNS                     # Linear + ReLU + BN1d
    enc1 = _block_forward(enc1, adj1, blk1)                   # Block 1

    enc2 = _relu(_mm(enc1, ew) + eb) * _BNS
    enc2 = _block_forward(enc2, adj2, blk2)                   # Block 2

    dec1 = _relu(_mm(enc2, dw) + db) * _BNS

    # fused output heads: [PI | M | THETA]
    out = _mm(dec1, ow) + ob                                  # (N, 3*dim)
    pi = out[:, :dim]
    mu = out[:, dim:2 * dim]
    th = out[:, 2 * dim:]
    pi_ref[...] = 1.0 / (1.0 + jnp.exp(-pi))                        # sigmoid
    m_ref[...] = jnp.clip(jnp.exp(mu), 1e-5, 1e6)                   # MeanAct
    sp = jnp.maximum(th, 0.0) + jnp.log1p(jnp.exp(-jnp.abs(th)))    # softplus
    th_ref[...] = jnp.clip(sp, 1e-4, 1e4)                           # DispAct


# ----------------------------------------------------------------------------
# wrapper: one pallas_call with full-array VMEM blocks
# ----------------------------------------------------------------------------
def _full_spec(shape):
    nd = len(shape)
    return pl.BlockSpec(shape, lambda *_: (0,) * nd)


def ae_forward(params, x, adj_hidden1, adj_hidden2, A, Bm):
    N, dim = x.shape
    f = lambda a: jnp.asarray(a, F32)
    row = lambda b: jnp.asarray(b, F32).reshape(1, -1)

    def block_inputs(bp):
        ea, cam = bp["ea"], bp["cam"]
        return [f(ea["kqv_w"]), row(ea["kqv_b"]), f(ea["r_w"]), row(ea["r_b"]),
                f(bp["head_mask"]),
                f(cam["pool_w1"]), f(cam["pool_w2"]),
                f(cam["adapt_w1"]), f(cam["adapt_w2"]),
                f(cam["dg_w1"]), f(cam["dg_w2"])]

    inputs = [f(x), f(A), f(Bm), f(adj_hidden1), f(adj_hidden2),
              f(params["input_w"]), row(params["input_b"]),
              f(params["encode_w"]), row(params["encode_b"]),
              f(params["decode_w"]), row(params["decode_b"]),
              f(params["out_w"]), row(params["out_b"])]
    inputs += block_inputs(params["block1"])
    inputs += block_inputs(params["block2"])

    out_sd = jax.ShapeDtypeStruct((N, dim), F32)
    return pl.pallas_call(
        _ae_kernel,
        out_shape=(out_sd, out_sd, out_sd),
        grid=(1,),
        in_specs=[_full_spec(a.shape) for a in inputs],
        out_specs=(_full_spec((N, dim)),) * 3,
        compiler_params=pltpu.CompilerParams(
            dimension_semantics=("arbitrary",)),
    )(*inputs)


# ----------------------------------------------------------------------------
# deterministic parameter init
# ----------------------------------------------------------------------------
def _w(key, shape, s=0.1):
    return jax.random.normal(key, shape, F32) * s


def init_block(key, C, heads):
    kc = vc = inf = C // 2
    assert kc % heads == 0
    hk = kc // heads
    ks = jax.random.split(key, 9)
    ea = dict(
        kqv_w=_w(ks[0], (C, 2 * kc + vc)),   # fused keys | queries | values convs
        kqv_b=_w(ks[1], (2 * kc + vc,)),
        r_w=_w(ks[2], (vc, C)), r_b=_w(ks[3], (C,)),
    )
    cam = dict(
        pool_w1=_w(ks[4], (C, C)), pool_w2=_w(ks[5], (C, inf)),
        adapt_w1=_w(ks[6], (C, C)), adapt_w2=_w(ks[7], (C, inf)),
        dg_w1=_w(ks[8], (2 * inf, inf)),
        dg_w2=jnp.zeros((inf, 2), F32),      # delta_gen[2].weight.data.zero_()
    )
    head_mask = jnp.asarray(np.kron(np.eye(heads), np.ones((hk, hk))), F32)
    return dict(ea=ea, cam=cam, head_mask=head_mask)


def init_params(key, dim, h1, h2, heads):
    ks = jax.random.split(key, 10)
    return dict(
        input_w=_w(ks[0], (dim, h1)), input_b=_w(ks[1], (h1,)),
        encode_w=_w(ks[2], (h1, h2)), encode_b=_w(ks[3], (h2,)),
        decode_w=_w(ks[4], (h2, h1)), decode_b=_w(ks[5], (h1,)),
        # fused output heads: columns [0:dim]=PI, [dim:2dim]=M, [2dim:3dim]=THETA
        out_w=_w(ks[6], (h1, 3 * dim)), out_b=_w(ks[7], (3 * dim,)),
        block1=init_block(ks[8], h1, heads),
        block2=init_block(ks[9], h2, heads),
    )


# ----------------------------------------------------------------------------
if __name__ == "__main__":
    N, dim, h1, h2, heads = 8, 16, 32, 16, 2

    key = jax.random.PRNGKey(0)
    kx, ka1, ka2, kA, kB, kp = jax.random.split(key, 6)
    x = jax.random.normal(kx, (N, dim), F32)
    adj_hidden1 = jax.random.normal(ka1, (N, h1), F32)
    adj_hidden2 = jax.random.normal(ka2, (N, h2), F32)
    A = jax.random.normal(kA, (N, N), F32) * 0.1
    B = jax.random.normal(kB, (dim, dim), F32) * 0.1

    params = init_params(kp, dim, h1, h2, heads)

    fwd = jax.jit(ae_forward)
    PI, M, THETA = fwd(params, x, adj_hidden1, adj_hidden2, A, B)
    jax.block_until_ready((PI, M, THETA))

    assert PI.shape == (N, dim) and M.shape == (N, dim) and THETA.shape == (N, dim)
    print("KERNEL_OK")
</pallas_src>

<mosaic_0001>
module attributes {stable_mosaic.version = 11 : i64} {
  func.func @_ae_kernel(%arg0: i32, %arg1: memref<8x16xf32, #tpu.memory_space<vmem>>, %arg2: memref<8x8xf32, #tpu.memory_space<vmem>>, %arg3: memref<16x16xf32, #tpu.memory_space<vmem>>, %arg4: memref<8x32xf32, #tpu.memory_space<vmem>>, %arg5: memref<8x16xf32, #tpu.memory_space<vmem>>, %arg6: memref<16x32xf32, #tpu.memory_space<vmem>>, %arg7: memref<1x32xf32, #tpu.memory_space<vmem>>, %arg8: memref<32x16xf32, #tpu.memory_space<vmem>>, %arg9: memref<1x16xf32, #tpu.memory_space<vmem>>, %arg10: memref<16x32xf32, #tpu.memory_space<vmem>>, %arg11: memref<1x32xf32, #tpu.memory_space<vmem>>, %arg12: memref<32x48xf32, #tpu.memory_space<vmem>>, %arg13: memref<1x48xf32, #tpu.memory_space<vmem>>, %arg14: memref<32x48xf32, #tpu.memory_space<vmem>>, %arg15: memref<1x48xf32, #tpu.memory_space<vmem>>, %arg16: memref<16x32xf32, #tpu.memory_space<vmem>>, %arg17: memref<1x32xf32, #tpu.memory_space<vmem>>, %arg18: memref<16x16xf32, #tpu.memory_space<vmem>>, %arg19: memref<32x32xf32, #tpu.memory_space<vmem>>, %arg20: memref<32x16xf32, #tpu.memory_space<vmem>>, %arg21: memref<32x32xf32, #tpu.memory_space<vmem>>, %arg22: memref<32x16xf32, #tpu.memory_space<vmem>>, %arg23: memref<32x16xf32, #tpu.memory_space<vmem>>, %arg24: memref<16x2xf32, #tpu.memory_space<vmem>>, %arg25: memref<16x24xf32, #tpu.memory_space<vmem>>, %arg26: memref<1x24xf32, #tpu.memory_space<vmem>>, %arg27: memref<8x16xf32, #tpu.memory_space<vmem>>, %arg28: memref<1x16xf32, #tpu.memory_space<vmem>>, %arg29: memref<8x8xf32, #tpu.memory_space<vmem>>, %arg30: memref<16x16xf32, #tpu.memory_space<vmem>>, %arg31: memref<16x8xf32, #tpu.memory_space<vmem>>, %arg32: memref<16x16xf32, #tpu.memory_space<vmem>>, %arg33: memref<16x8xf32, #tpu.memory_space<vmem>>, %arg34: memref<16x8xf32, #tpu.memory_space<vmem>>, %arg35: memref<8x2xf32, #tpu.memory_space<vmem>>, %arg36: memref<8x16xf32, #tpu.memory_space<vmem>>, %arg37: memref<8x16xf32, #tpu.memory_space<vmem>>, %arg38: memref<8x16xf32, #tpu.memory_space<vmem>>) attributes {dimension_semantics = [#tpu.dimension_semantics<arbitrary>], iteration_bounds = array<i64: 1>, scalar_prefetch = 0 : i64, scratch_operands = 0 : i64, tpu.core_type = #tpu.core_type<tc>, window_params = [{pipeline_mode = #tpu.pipeline_mode<synchronous>, transform_indices = @transform_0, window_bounds = array<i64: 8, 16>}, {pipeline_mode = #tpu.pipeline_mode<synchronous>, transform_indices = @transform_1, window_bounds = array<i64: 8, 8>}, {pipeline_mode = #tpu.pipeline_mode<synchronous>, transform_indices = @transform_2, window_bounds = array<i64: 16, 16>}, {pipeline_mode = #tpu.pipeline_mode<synchronous>, transform_indices = @transform_3, window_bounds = array<i64: 8, 32>}, {pipeline_mode = #tpu.pipeline_mode<synchronous>, transform_indices = @transform_4, window_bounds = array<i64: 8, 16>}, {pipeline_mode = #tpu.pipeline_mode<synchronous>, transform_indices = @transform_5, window_bounds = array<i64: 16, 32>}, {pipeline_mode = #tpu.pipeline_mode<synchronous>, transform_indices = @transform_6, window_bounds = array<i64: 1, 32>}, {pipeline_mode = #tpu.pipeline_mode<synchronous>, transform_indices = @transform_7, window_bounds = array<i64: 32, 16>}, {pipeline_mode = #tpu.pipeline_mode<synchronous>, transform_indices = @transform_8, window_bounds = array<i64: 1, 16>}, {pipeline_mode = #tpu.pipeline_mode<synchronous>, transform_indices = @transform_9, window_bounds = array<i64: 16, 32>}, {pipeline_mode = #tpu.pipeline_mode<synchronous>, transform_indices = @transform_10, window_bounds = array<i64: 1, 32>}, {pipeline_mode = #tpu.pipeline_mode<synchronous>, transform_indices = @transform_11, window_bounds = array<i64: 32, 48>}, {pipeline_mode = #tpu.pipeline_mode<synchronous>, transform_indices = @transform_12, window_bounds = array<i64: 1, 48>}, {pipeline_mode = #tpu.pipeline_mode<synchronous>, transform_indices = @transform_13, window_bounds = array<i64: 32, 48>}, {pipeline_mode = #tpu.pipeline_mode<synchronous>, transform_indices = @transform_14, window_bounds = array<i64: 1, 48>}, {pipeline_mode = #tpu.pipeline_mode<synchronous>, transform_indices = @transform_15, window_bounds = array<i64: 16, 32>}, {pipeline_mode = #tpu.pipeline_mode<synchronous>, transform_indices = @transform_16, window_bounds = array<i64: 1, 32>}, {pipeline_mode = #tpu.pipeline_mode<synchronous>, transform_indices = @transform_17, window_bounds = array<i64: 16, 16>}, {pipeline_mode = #tpu.pipeline_mode<synchronous>, transform_indices = @transform_18, window_bounds = array<i64: 32, 32>}, {pipeline_mode = #tpu.pipeline_mode<synchronous>, transform_indices = @transform_19, window_bounds = array<i64: 32, 16>}, {pipeline_mode = #tpu.pipeline_mode<synchronous>, transform_indices = @transform_20, window_bounds = array<i64: 32, 32>}, {pipeline_mode = #tpu.pipeline_mode<synchronous>, transform_indices = @transform_21, window_bounds = array<i64: 32, 16>}, {pipeline_mode = #tpu.pipeline_mode<synchronous>, transform_indices = @transform_22, window_bounds = array<i64: 32, 16>}, {pipeline_mode = #tpu.pipeline_mode<synchronous>, transform_indices = @transform_23, window_bounds = array<i64: 16, 2>}, {pipeline_mode = #tpu.pipeline_mode<synchronous>, transform_indices = @transform_24, window_bounds = array<i64: 16, 24>}, {pipeline_mode = #tpu.pipeline_mode<synchronous>, transform_indices = @transform_25, window_bounds = array<i64: 1, 24>}, {pipeline_mode = #tpu.pipeline_mode<synchronous>, transform_indices = @transform_26, window_bounds = array<i64: 8, 16>}, {pipeline_mode = #tpu.pipeline_mode<synchronous>, transform_indices = @transform_27, window_bounds = array<i64: 1, 16>}, {pipeline_mode = #tpu.pipeline_mode<synchronous>, transform_indices = @transform_28, window_bounds = array<i64: 8, 8>}, {pipeline_mode = #tpu.pipeline_mode<synchronous>, transform_indices = @transform_29, window_bounds = array<i64: 16, 16>}, {pipeline_mode = #tpu.pipeline_mode<synchronous>, transform_indices = @transform_30, window_bounds = array<i64: 16, 8>}, {pipeline_mode = #tpu.pipeline_mode<synchronous>, transform_indices = @transform_31, window_bounds = array<i64: 16, 16>}, {pipeline_mode = #tpu.pipeline_mode<synchronous>, transform_indices = @transform_32, window_bounds = array<i64: 16, 8>}, {pipeline_mode = #tpu.pipeline_mode<synchronous>, transform_indices = @transform_33, window_bounds = array<i64: 16, 8>}, {pipeline_mode = #tpu.pipeline_mode<synchronous>, transform_indices = @transform_34, window_bounds = array<i64: 8, 2>}, {pipeline_mode = #tpu.pipeline_mode<synchronous>, transform_indices = @transform_35, window_bounds = array<i64: 8, 16>}, {pipeline_mode = #tpu.pipeline_mode<synchronous>, transform_indices = @transform_36, window_bounds = array<i64: 8, 16>}, {pipeline_mode = #tpu.pipeline_mode<synchronous>, transform_indices = @transform_37, window_bounds = array<i64: 8, 16>}]} {
    %c0 = arith.constant 0 : index
    %c0_0 = arith.constant 0 : index
    %0 = vector.load %arg1[%c0, %c0_0] : memref<8x16xf32, #tpu.memory_space<vmem>>, vector<8x16xf32>
    %c0_1 = arith.constant 0 : index
    %c0_2 = arith.constant 0 : index
    %1 = vector.load %arg2[%c0_1, %c0_2] : memref<8x8xf32, #tpu.memory_space<vmem>>, vector<8x8xf32>
    %c0_3 = arith.constant 0 : index
    %c0_4 = arith.constant 0 : index
    %2 = vector.load %arg3[%c0_3, %c0_4] : memref<16x16xf32, #tpu.memory_space<vmem>>, vector<16x16xf32>
    %c0_5 = arith.constant 0 : index
    %c0_6 = arith.constant 0 : index
    %3 = vector.load %arg4[%c0_5, %c0_6] : memref<8x32xf32, #tpu.memory_space<vmem>>, vector<8x32xf32>
    %c0_7 = arith.constant 0 : index
    %c0_8 = arith.constant 0 : index
    %4 = vector.load %arg5[%c0_7, %c0_8] : memref<8x16xf32, #tpu.memory_space<vmem>>, vector<8x16xf32>
    %c0_9 = arith.constant 0 : index
    %c0_10 = arith.constant 0 : index
    %5 = vector.load %arg6[%c0_9, %c0_10] : memref<16x32xf32, #tpu.memory_space<vmem>>, vector<16x32xf32>
    %c0_11 = arith.constant 0 : index
    %c0_12 = arith.constant 0 : index
    %6 = vector.load %arg7[%c0_11, %c0_12] : memref<1x32xf32, #tpu.memory_space<vmem>>, vector<1x32xf32>
    %c0_13 = arith.constant 0 : index
    %c0_14 = arith.constant 0 : index
    %7 = vector.load %arg8[%c0_13, %c0_14] : memref<32x16xf32, #tpu.memory_space<vmem>>, vector<32x16xf32>
    %c0_15 = arith.constant 0 : index
    %c0_16 = arith.constant 0 : index
    %8 = vector.load %arg9[%c0_15, %c0_16] : memref<1x16xf32, #tpu.memory_space<vmem>>, vector<1x16xf32>
    %c0_17 = arith.constant 0 : index
    %c0_18 = arith.constant 0 : index
    %9 = vector.load %arg10[%c0_17, %c0_18] : memref<16x32xf32, #tpu.memory_space<vmem>>, vector<16x32xf32>
    %c0_19 = arith.constant 0 : index
    %c0_20 = arith.constant 0 : index
    %10 = vector.load %arg11[%c0_19, %c0_20] : memref<1x32xf32, #tpu.memory_space<vmem>>, vector<1x32xf32>
    %c0_21 = arith.constant 0 : index
    %c0_22 = arith.constant 0 : index
    %11 = vector.load %arg12[%c0_21, %c0_22] : memref<32x48xf32, #tpu.memory_space<vmem>>, vector<32x48xf32>
    %c0_23 = arith.constant 0 : index
    %c0_24 = arith.constant 0 : index
    %12 = vector.load %arg13[%c0_23, %c0_24] : memref<1x48xf32, #tpu.memory_space<vmem>>, vector<1x48xf32>
    %c0_25 = arith.constant 0 : index
    %c0_26 = arith.constant 0 : index
    %13 = vector.load %arg14[%c0_25, %c0_26] : memref<32x48xf32, #tpu.memory_space<vmem>>, vector<32x48xf32>
    %c0_27 = arith.constant 0 : index
    %c0_28 = arith.constant 0 : index
    %14 = vector.load %arg15[%c0_27, %c0_28] : memref<1x48xf32, #tpu.memory_space<vmem>>, vector<1x48xf32>
    %c0_29 = arith.constant 0 : index
    %c0_30 = arith.constant 0 : index
    %15 = vector.load %arg16[%c0_29, %c0_30] : memref<16x32xf32, #tpu.memory_space<vmem>>, vector<16x32xf32>
    %c0_31 = arith.constant 0 : index
    %c0_32 = arith.constant 0 : index
    %16 = vector.load %arg17[%c0_31, %c0_32] : memref<1x32xf32, #tpu.memory_space<vmem>>, vector<1x32xf32>
    %c0_33 = arith.constant 0 : index
    %c0_34 = arith.constant 0 : index
    %17 = vector.load %arg18[%c0_33, %c0_34] : memref<16x16xf32, #tpu.memory_space<vmem>>, vector<16x16xf32>
    %c0_35 = arith.constant 0 : index
    %c0_36 = arith.constant 0 : index
    %18 = vector.load %arg19[%c0_35, %c0_36] : memref<32x32xf32, #tpu.memory_space<vmem>>, vector<32x32xf32>
    %c0_37 = arith.constant 0 : index
    %c0_38 = arith.constant 0 : index
    %19 = vector.load %arg20[%c0_37, %c0_38] : memref<32x16xf32, #tpu.memory_space<vmem>>, vector<32x16xf32>
    %c0_39 = arith.constant 0 : index
    %c0_40 = arith.constant 0 : index
    %20 = vector.load %arg21[%c0_39, %c0_40] : memref<32x32xf32, #tpu.memory_space<vmem>>, vector<32x32xf32>
    %c0_41 = arith.constant 0 : index
    %c0_42 = arith.constant 0 : index
    %21 = vector.load %arg22[%c0_41, %c0_42] : memref<32x16xf32, #tpu.memory_space<vmem>>, vector<32x16xf32>
    %c0_43 = arith.constant 0 : index
    %c0_44 = arith.constant 0 : index
    %22 = vector.load %arg23[%c0_43, %c0_44] : memref<32x16xf32, #tpu.memory_space<vmem>>, vector<32x16xf32>
    %c0_45 = arith.constant 0 : index
    %c0_46 = arith.constant 0 : index
    %23 = vector.load %arg24[%c0_45, %c0_46] : memref<16x2xf32, #tpu.memory_space<vmem>>, vector<16x2xf32>
    %c0_47 = arith.constant 0 : index
    %c0_48 = arith.constant 0 : index
    %24 = vector.load %arg25[%c0_47, %c0_48] : memref<16x24xf32, #tpu.memory_space<vmem>>, vector<16x24xf32>
    %c0_49 = arith.constant 0 : index
    %c0_50 = arith.constant 0 : index
    %25 = vector.load %arg26[%c0_49, %c0_50] : memref<1x24xf32, #tpu.memory_space<vmem>>, vector<1x24xf32>
    %c0_51 = arith.constant 0 : index
    %c0_52 = arith.constant 0 : index
    %26 = vector.load %arg27[%c0_51, %c0_52] : memref<8x16xf32, #tpu.memory_space<vmem>>, vector<8x16xf32>
    %c0_53 = arith.constant 0 : index
    %c0_54 = arith.constant 0 : index
    %27 = vector.load %arg28[%c0_53, %c0_54] : memref<1x16xf32, #tpu.memory_space<vmem>>, vector<1x16xf32>
    %c0_55 = arith.constant 0 : index
    %c0_56 = arith.constant 0 : index
    %28 = vector.load %arg29[%c0_55, %c0_56] : memref<8x8xf32, #tpu.memory_space<vmem>>, vector<8x8xf32>
    %c0_57 = arith.constant 0 : index
    %c0_58 = arith.constant 0 : index
    %29 = vector.load %arg30[%c0_57, %c0_58] : memref<16x16xf32, #tpu.memory_space<vmem>>, vector<16x16xf32>
    %c0_59 = arith.constant 0 : index
    %c0_60 = arith.constant 0 : index
    %30 = vector.load %arg31[%c0_59, %c0_60] : memref<16x8xf32, #tpu.memory_space<vmem>>, vector<16x8xf32>
    %c0_61 = arith.constant 0 : index
    %c0_62 = arith.constant 0 : index
    %31 = vector.load %arg32[%c0_61, %c0_62] : memref<16x16xf32, #tpu.memory_space<vmem>>, vector<16x16xf32>
    %c0_63 = arith.constant 0 : index
    %c0_64 = arith.constant 0 : index
    %32 = vector.load %arg33[%c0_63, %c0_64] : memref<16x8xf32, #tpu.memory_space<vmem>>, vector<16x8xf32>
    %c0_65 = arith.constant 0 : index
    %c0_66 = arith.constant 0 : index
    %33 = vector.load %arg34[%c0_65, %c0_66] : memref<16x8xf32, #tpu.memory_space<vmem>>, vector<16x8xf32>
    %c0_67 = arith.constant 0 : index
    %c0_68 = arith.constant 0 : index
    %34 = vector.load %arg35[%c0_67, %c0_68] : memref<8x2xf32, #tpu.memory_space<vmem>>, vector<8x2xf32>
    %cst = arith.constant dense<0.000000e+00> : vector<8x16xf32>
    %35 = tpu.matmul %1, %0, %cst {dimension_numbers = #tpu.dot_dimension_numbers<[1], [0], [0], [1], [0, 0, 1, 1], [], []>} : vector<8x8xf32>, vector<8x16xf32>, vector<8x16xf32> -> vector<8x16xf32>
    %cst_69 = arith.constant dense<0.000000e+00> : vector<8x16xf32>
    %36 = tpu.matmul %35, %2, %cst_69 {dimension_numbers = #tpu.dot_dimension_numbers<[1], [0], [0], [1], [0, 0, 1, 1], [], []>} : vector<8x16xf32>, vector<16x16xf32>, vector<8x16xf32> -> vector<8x16xf32>
    %cst_70 = arith.constant 0.000000e+00 : f32
    %37 = vector.broadcast %cst_70 : f32 to vector<8x16xf32>
    %38 = arith.maximumf %36, %37 : vector<8x16xf32>
    %cst_71 = arith.constant dense<0.000000e+00> : vector<8x32xf32>
    %39 = tpu.matmul %38, %5, %cst_71 {dimension_numbers = #tpu.dot_dimension_numbers<[1], [0], [0], [1], [0, 0, 1, 1], [], []>} : vector<8x16xf32>, vector<16x32xf32>, vector<8x32xf32> -> vector<8x32xf32>
    %40 = vector.broadcast %6 : vector<1x32xf32> to vector<8x32xf32>
    %41 = arith.addf %39, %40 : vector<8x32xf32>
    %cst_72 = arith.constant 0.000000e+00 : f32
    %42 = vector.broadcast %cst_72 : f32 to vector<8x32xf32>
    %43 = arith.maximumf %41, %42 : vector<8x32xf32>
    %cst_73 = arith.constant 0.999994993 : f32
    %44 = vector.broadcast %cst_73 : f32 to vector<8x32xf32>
    %45 = arith.mulf %43, %44 : vector<8x32xf32>
    %cst_74 = arith.constant dense<0.000000e+00> : vector<8x48xf32>
    %46 = tpu.matmul %45, %13, %cst_74 {dimension_numbers = #tpu.dot_dimension_numbers<[1], [0], [0], [1], [0, 0, 1, 1], [], []>} : vector<8x32xf32>, vector<32x48xf32>, vector<8x48xf32> -> vector<8x48xf32>
    %47 = vector.broadcast %14 : vector<1x48xf32> to vector<8x48xf32>
    %48 = arith.addf %46, %47 : vector<8x48xf32>
    %49 = vector.extract_strided_slice %48 {offsets = [0, 0], sizes = [8, 16], strides = [1, 1]} : vector<8x48xf32> to vector<8x16xf32>
    %50 = vector.extract_strided_slice %48 {offsets = [0, 16], sizes = [8, 16], strides = [1, 1]} : vector<8x48xf32> to vector<8x16xf32>
    %51 = vector.extract_strided_slice %48 {offsets = [0, 32], sizes = [8, 16], strides = [1, 1]} : vector<8x48xf32> to vector<8x16xf32>
    %cst_75 = arith.constant dense<0xFF800000> : vector<16xf32>
    %52 = vector.multi_reduction <maximumf>, %49, %cst_75 [0] : vector<8x16xf32> to vector<16xf32>
    %53 = vector.shape_cast %52 : vector<16xf32> to vector<1x16xf32>
    %54 = vector.broadcast %53 : vector<1x16xf32> to vector<8x16xf32>
    %55 = arith.subf %49, %54 : vector<8x16xf32>
    %56 = math.exp %55 : vector<8x16xf32>
    %cst_76 = arith.constant dense<0.000000e+00> : vector<16xf32>
    %57 = vector.multi_reduction <add>, %56, %cst_76 [0] : vector<8x16xf32> to vector<16xf32>
    %58 = vector.shape_cast %57 : vector<16xf32> to vector<1x16xf32>
    %59 = vector.broadcast %58 : vector<1x16xf32> to vector<8x16xf32>
    %60 = arith.divf %56, %59 : vector<8x16xf32>
    %cst_77 = arith.constant dense<0xFF800000> : vector<8xf32>
    %61 = vector.multi_reduction <maximumf>, %50, %cst_77 [1] : vector<8x16xf32> to vector<8xf32>
    %62 = vector.shape_cast %61 : vector<8xf32> to vector<8x1xf32>
    %63 = vector.broadcast %62 : vector<8x1xf32> to vector<8x16xf32>
    %64 = arith.subf %50, %63 : vector<8x16xf32>
    %65 = math.exp %64 : vector<8x16xf32>
    %cst_78 = arith.constant dense<0.000000e+00> : vector<8x16xf32>
    %66 = tpu.matmul %65, %17, %cst_78 {dimension_numbers = #tpu.dot_dimension_numbers<[1], [0], [0], [1], [0, 0, 1, 1], [], []>} : vector<8x16xf32>, vector<16x16xf32>, vector<8x16xf32> -> vector<8x16xf32>
    %67 = arith.divf %65, %66 : vector<8x16xf32>
    %68 = tpu.transpose %60, [1, 0] : vector<8x16xf32> -> vector<16x8xf32>
    %cst_79 = arith.constant dense<0.000000e+00> : vector<16x16xf32>
    %69 = tpu.matmul %68, %51, %cst_79 {dimension_numbers = #tpu.dot_dimension_numbers<[1], [0], [0], [1], [0, 0, 1, 1], [], []>} : vector<16x8xf32>, vector<8x16xf32>, vector<16x16xf32> -> vector<16x16xf32>
    %70 = arith.mulf %69, %17 : vector<16x16xf32>
    %cst_80 = arith.constant dense<0.000000e+00> : vector<8x16xf32>
    %71 = tpu.matmul %67, %70, %cst_80 {dimension_numbers = #tpu.dot_dimension_numbers<[1], [0], [0], [1], [0, 0, 1, 1], [], []>} : vector<8x16xf32>, vector<16x16xf32>, vector<8x16xf32> -> vector<8x16xf32>
    %cst_81 = arith.constant dense<0.000000e+00> : vector<8x32xf32>
    %72 = tpu.matmul %71, %15, %cst_81 {dimension_numbers = #tpu.dot_dimension_numbers<[1], [0], [0], [1], [0, 0, 1, 1], [], []>} : vector<8x16xf32>, vector<16x32xf32>, vector<8x32xf32> -> vector<8x32xf32>
    %73 = vector.broadcast %16 : vector<1x32xf32> to vector<8x32xf32>
    %74 = arith.addf %72, %73 : vector<8x32xf32>
    %75 = arith.addf %74, %45 : vector<8x32xf32>
    %cst_82 = arith.constant dense<0.000000e+00> : vector<8x48xf32>
    %76 = tpu.matmul %3, %13, %cst_82 {dimension_numbers = #tpu.dot_dimension_numbers<[1], [0], [0], [1], [0, 0, 1, 1], [], []>} : vector<8x32xf32>, vector<32x48xf32>, vector<8x48xf32> -> vector<8x48xf32>
    %77 = vector.broadcast %14 : vector<1x48xf32> to vector<8x48xf32>
    %78 = arith.addf %76, %77 : vector<8x48xf32>
    %79 = vector.extract_strided_slice %78 {offsets = [0, 0], sizes = [8, 16], strides = [1, 1]} : vector<8x48xf32> to vector<8x16xf32>
    %80 = vector.extract_strided_slice %78 {offsets = [0, 16], sizes = [8, 16], strides = [1, 1]} : vector<8x48xf32> to vector<8x16xf32>
    %81 = vector.extract_strided_slice %78 {offsets = [0, 32], sizes = [8, 16], strides = [1, 1]} : vector<8x48xf32> to vector<8x16xf32>
    %cst_83 = arith.constant dense<0xFF800000> : vector<16xf32>
    %82 = vector.multi_reduction <maximumf>, %79, %cst_83 [0] : vector<8x16xf32> to vector<16xf32>
    %83 = vector.shape_cast %82 : vector<16xf32> to vector<1x16xf32>
    %84 = vector.broadcast %83 : vector<1x16xf32> to vector<8x16xf32>
    %85 = arith.subf %79, %84 : vector<8x16xf32>
    %86 = math.exp %85 : vector<8x16xf32>
    %cst_84 = arith.constant dense<0.000000e+00> : vector<16xf32>
    %87 = vector.multi_reduction <add>, %86, %cst_84 [0] : vector<8x16xf32> to vector<16xf32>
    %88 = vector.shape_cast %87 : vector<16xf32> to vector<1x16xf32>
    %89 = vector.broadcast %88 : vector<1x16xf32> to vector<8x16xf32>
    %90 = arith.divf %86, %89 : vector<8x16xf32>
    %cst_85 = arith.constant dense<0xFF800000> : vector<8xf32>
    %91 = vector.multi_reduction <maximumf>, %80, %cst_85 [1] : vector<8x16xf32> to vector<8xf32>
    %92 = vector.shape_cast %91 : vector<8xf32> to vector<8x1xf32>
    %93 = vector.broadcast %92 : vector<8x1xf32> to vector<8x16xf32>
    %94 = arith.subf %80, %93 : vector<8x16xf32>
    %95 = math.exp %94 : vector<8x16xf32>
    %cst_86 = arith.constant dense<0.000000e+00> : vector<8x16xf32>
    %96 = tpu.matmul %95, %17, %cst_86 {dimension_numbers = #tpu.dot_dimension_numbers<[1], [0], [0], [1], [0, 0, 1, 1], [], []>} : vector<8x16xf32>, vector<16x16xf32>, vector<8x16xf32> -> vector<8x16xf32>
    %97 = arith.divf %95, %96 : vector<8x16xf32>
    %98 = tpu.transpose %90, [1, 0] : vector<8x16xf32> -> vector<16x8xf32>
    %cst_87 = arith.constant dense<0.000000e+00> : vector<16x16xf32>
    %99 = tpu.matmul %98, %81, %cst_87 {dimension_numbers = #tpu.dot_dimension_numbers<[1], [0], [0], [1], [0, 0, 1, 1], [], []>} : vector<16x8xf32>, vector<8x16xf32>, vector<16x16xf32> -> vector<16x16xf32>
    %100 = arith.mulf %99, %17 : vector<16x16xf32>
    %cst_88 = arith.constant dense<0.000000e+00> : vector<8x16xf32>
    %101 = tpu.matmul %97, %100, %cst_88 {dimension_numbers = #tpu.dot_dimension_numbers<[1], [0], [0], [1], [0, 0, 1, 1], [], []>} : vector<8x16xf32>, vector<16x16xf32>, vector<8x16xf32> -> vector<8x16xf32>
    %cst_89 = arith.constant dense<0.000000e+00> : vector<8x32xf32>
    %102 = tpu.matmul %101, %15, %cst_89 {dimension_numbers = #tpu.dot_dimension_numbers<[1], [0], [0], [1], [0, 0, 1, 1], [], []>} : vector<8x16xf32>, vector<16x32xf32>, vector<8x32xf32> -> vector<8x32xf32>
    %103 = vector.broadcast %16 : vector<1x32xf32> to vector<8x32xf32>
    %104 = arith.addf %102, %103 : vector<8x32xf32>
    %105 = arith.addf %104, %3 : vector<8x32xf32>
    %106 = arith.addf %75, %105 : vector<8x32xf32>
    %cst_90 = arith.constant 5.000000e-01 : f32
    %107 = vector.broadcast %cst_90 : f32 to vector<8x32xf32>
    %108 = arith.mulf %106, %107 : vector<8x32xf32>
    %cst_91 = arith.constant dense<0.000000e+00> : vector<32xf32>
    %109 = vector.multi_reduction <add>, %45, %cst_91 [0] : vector<8x32xf32> to vector<32xf32>
    %110 = vector.shape_cast %109 : vector<32xf32> to vector<1x32xf32>
    %cst_92 = arith.constant 8.000000e+00 : f32
    %111 = vector.broadcast %cst_92 : f32 to vector<1x32xf32>
    %112 = arith.divf %110, %111 : vector<1x32xf32>
    %cst_93 = arith.constant dense<0.000000e+00> : vector<32xf32>
    %113 = vector.multi_reduction <add>, %3, %cst_93 [0] : vector<8x32xf32> to vector<32xf32>
    %114 = vector.shape_cast %113 : vector<32xf32> to vector<1x32xf32>
    %cst_94 = arith.constant 8.000000e+00 : f32
    %115 = vector.broadcast %cst_94 : f32 to vector<1x32xf32>
    %116 = arith.divf %114, %115 : vector<1x32xf32>
    %117 = tpu.concatenate %112, %116 in 0 : vector<1x32xf32>, vector<1x32xf32> -> vector<2x32xf32>
    %cst_95 = arith.constant dense<0.000000e+00> : vector<2x32xf32>
    %118 = tpu.matmul %117, %18, %cst_95 {dimension_numbers = #tpu.dot_dimension_numbers<[1], [0], [0], [1], [0, 0, 1, 1], [], []>} : vector<2x32xf32>, vector<32x32xf32>, vector<2x32xf32> -> vector<2x32xf32>
    %cst_96 = arith.constant 0.999994993 : f32
    %119 = vector.broadcast %cst_96 : f32 to vector<2x32xf32>
    %120 = arith.mulf %118, %119 : vector<2x32xf32>
    %cst_97 = arith.constant dense<0.000000e+00> : vector<2x16xf32>
    %121 = tpu.matmul %120, %19, %cst_97 {dimension_numbers = #tpu.dot_dimension_numbers<[1], [0], [0], [1], [0, 0, 1, 1], [], []>} : vector<2x32xf32>, vector<32x16xf32>, vector<2x16xf32> -> vector<2x16xf32>
    %cst_98 = arith.constant 0.999994993 : f32
    %122 = vector.broadcast %cst_98 : f32 to vector<2x16xf32>
    %123 = arith.mulf %121, %122 : vector<2x16xf32>
    %124 = vector.extract_strided_slice %22 {offsets = [0, 0], sizes = [16, 16], strides = [1, 1]} : vector<32x16xf32> to vector<16x16xf32>
    %125 = vector.extract_strided_slice %22 {offsets = [16, 0], sizes = [16, 16], strides = [1, 1]} : vector<32x16xf32> to vector<16x16xf32>
    %cst_99 = arith.constant dense<0.000000e+00> : vector<2x16xf32>
    %126 = tpu.matmul %123, %125, %cst_99 {dimension_numbers = #tpu.dot_dimension_numbers<[1], [0], [0], [1], [0, 0, 1, 1], [], []>} : vector<2x16xf32>, vector<16x16xf32>, vector<2x16xf32> -> vector<2x16xf32>
    %127 = tpu.iota {dimensions = array<i32: 0>} : vector<8x1xi32>
    %128 = arith.sitofp %127 : vector<8x1xi32> to vector<8x1xf32>
    %cst_100 = arith.constant 0.285714298 : f32
    %129 = vector.broadcast %cst_100 : f32 to vector<8x1xf32>
    %130 = arith.mulf %128, %129 : vector<8x1xf32>
    %cst_101 = arith.constant 1.000000e+00 : f32
    %131 = vector.broadcast %cst_101 : f32 to vector<8x1xf32>
    %132 = arith.subf %130, %131 : vector<8x1xf32>
    %cst_102 = arith.constant dense<0.000000e+00> : vector<8x32xf32>
    %133 = tpu.matmul %45, %20, %cst_102 {dimension_numbers = #tpu.dot_dimension_numbers<[1], [0], [0], [1], [0, 0, 1, 1], [], []>} : vector<8x32xf32>, vector<32x32xf32>, vector<8x32xf32> -> vector<8x32xf32>
    %cst_103 = arith.constant 0.999994993 : f32
    %134 = vector.broadcast %cst_103 : f32 to vector<8x32xf32>
    %135 = arith.mulf %133, %134 : vector<8x32xf32>
    %cst_104 = arith.constant dense<0.000000e+00> : vector<8x16xf32>
    %136 = tpu.matmul %135, %21, %cst_104 {dimension_numbers = #tpu.dot_dimension_numbers<[1], [0], [0], [1], [0, 0, 1, 1], [], []>} : vector<8x32xf32>, vector<32x16xf32>, vector<8x16xf32> -> vector<8x16xf32>
    %cst_105 = arith.constant 0.999994993 : f32
    %137 = vector.broadcast %cst_105 : f32 to vector<8x16xf32>
    %138 = arith.mulf %136, %137 : vector<8x16xf32>
    %cst_106 = arith.constant dense<0.000000e+00> : vector<8x16xf32>
    %139 = tpu.matmul %138, %124, %cst_106 {dimension_numbers = #tpu.dot_dimension_numbers<[1], [0], [0], [1], [0, 0, 1, 1], [], []>} : vector<8x16xf32>, vector<16x16xf32>, vector<8x16xf32> -> vector<8x16xf32>
    %140 = vector.extract_strided_slice %126 {offsets = [0, 0], sizes = [1, 16], strides = [1, 1]} : vector<2x16xf32> to vector<1x16xf32>
    %141 = vector.broadcast %140 : vector<1x16xf32> to vector<8x16xf32>
    %142 = arith.addf %139, %141 : vector<8x16xf32>
    %cst_107 = arith.constant 0.999994993 : f32
    %143 = vector.broadcast %cst_107 : f32 to vector<8x16xf32>
    %144 = arith.mulf %142, %143 : vector<8x16xf32>
    %cst_108 = arith.constant dense<0.000000e+00> : vector<8x2xf32>
    %145 = tpu.matmul %144, %23, %cst_108 {dimension_numbers = #tpu.dot_dimension_numbers<[1], [0], [0], [1], [0, 0, 1, 1], [], []>} : vector<8x16xf32>, vector<16x2xf32>, vector<8x2xf32> -> vector<8x2xf32>
    %146 = vector.extract_strided_slice %145 {offsets = [0, 0], sizes = [8, 1], strides = [1, 1]} : vector<8x2xf32> to vector<8x1xf32>
    %147 = arith.addf %132, %146 : vector<8x1xf32>
    %148 = vector.extract_strided_slice %145 {offsets = [0, 1], sizes = [8, 1], strides = [1, 1]} : vector<8x2xf32> to vector<8x1xf32>
    %cst_109 = arith.constant 1.000000e+00 : f32
    %149 = vector.broadcast %cst_109 : f32 to vector<8x1xf32>
    %150 = arith.subf %148, %149 : vector<8x1xf32>
    %151 = math.absf %147 : vector<8x1xf32>
    %cst_110 = arith.constant 5.000000e-01 : f32
    %152 = vector.broadcast %cst_110 : f32 to vector<8x1xf32>
    %153 = arith.mulf %151, %152 : vector<8x1xf32>
    %cst_111 = arith.constant 1.000000e+00 : f32
    %154 = vector.broadcast %cst_111 : f32 to vector<8x1xf32>
    %155 = arith.subf %154, %153 : vector<8x1xf32>
    %cst_112 = arith.constant 0.000000e+00 : f32
    %156 = vector.broadcast %cst_112 : f32 to vector<8x1xf32>
    %157 = arith.maximumf %155, %156 : vector<8x1xf32>
    %158 = math.absf %150 : vector<8x1xf32>
    %cst_113 = arith.constant 5.000000e-01 : f32
    %159 = vector.broadcast %cst_113 : f32 to vector<8x1xf32>
    %160 = arith.mulf %158, %159 : vector<8x1xf32>
    %cst_114 = arith.constant 1.000000e+00 : f32
    %161 = vector.broadcast %cst_114 : f32 to vector<8x1xf32>
    %162 = arith.subf %161, %160 : vector<8x1xf32>
    %cst_115 = arith.constant 0.000000e+00 : f32
    %163 = vector.broadcast %cst_115 : f32 to vector<8x1xf32>
    %164 = arith.maximumf %162, %163 : vector<8x1xf32>
    %165 = arith.mulf %157, %164 : vector<8x1xf32>
    %166 = vector.extract_strided_slice %123 {offsets = [0, 0], sizes = [1, 16], strides = [1, 1]} : vector<2x16xf32> to vector<1x16xf32>
    %167 = vector.broadcast %165 : vector<8x1xf32> to vector<8x16xf32>
    %168 = vector.broadcast %166 : vector<1x16xf32> to vector<8x16xf32>
    %169 = arith.mulf %167, %168 : vector<8x16xf32>
    %cst_116 = arith.constant dense<0.000000e+00> : vector<8x32xf32>
    %170 = tpu.matmul %3, %20, %cst_116 {dimension_numbers = #tpu.dot_dimension_numbers<[1], [0], [0], [1], [0, 0, 1, 1], [], []>} : vector<8x32xf32>, vector<32x32xf32>, vector<8x32xf32> -> vector<8x32xf32>
    %cst_117 = arith.constant 0.999994993 : f32
    %171 = vector.broadcast %cst_117 : f32 to vector<8x32xf32>
    %172 = arith.mulf %170, %171 : vector<8x32xf32>
    %cst_118 = arith.constant dense<0.000000e+00> : vector<8x16xf32>
    %173 = tpu.matmul %172, %21, %cst_118 {dimension_numbers = #tpu.dot_dimension_numbers<[1], [0], [0], [1], [0, 0, 1, 1], [], []>} : vector<8x32xf32>, vector<32x16xf32>, vector<8x16xf32> -> vector<8x16xf32>
    %cst_119 = arith.constant 0.999994993 : f32
    %174 = vector.broadcast %cst_119 : f32 to vector<8x16xf32>
    %175 = arith.mulf %173, %174 : vector<8x16xf32>
    %cst_120 = arith.constant dense<0.000000e+00> : vector<8x16xf32>
    %176 = tpu.matmul %175, %124, %cst_120 {dimension_numbers = #tpu.dot_dimension_numbers<[1], [0], [0], [1], [0, 0, 1, 1], [], []>} : vector<8x16xf32>, vector<16x16xf32>, vector<8x16xf32> -> vector<8x16xf32>
    %177 = vector.extract_strided_slice %126 {offsets = [1, 0], sizes = [1, 16], strides = [1, 1]} : vector<2x16xf32> to vector<1x16xf32>
    %178 = vector.broadcast %177 : vector<1x16xf32> to vector<8x16xf32>
    %179 = arith.addf %176, %178 : vector<8x16xf32>
    %cst_121 = arith.constant 0.999994993 : f32
    %180 = vector.broadcast %cst_121 : f32 to vector<8x16xf32>
    %181 = arith.mulf %179, %180 : vector<8x16xf32>
    %cst_122 = arith.constant dense<0.000000e+00> : vector<8x2xf32>
    %182 = tpu.matmul %181, %23, %cst_122 {dimension_numbers = #tpu.dot_dimension_numbers<[1], [0], [0], [1], [0, 0, 1, 1], [], []>} : vector<8x16xf32>, vector<16x2xf32>, vector<8x2xf32> -> vector<8x2xf32>
    %183 = vector.extract_strided_slice %182 {offsets = [0, 0], sizes = [8, 1], strides = [1, 1]} : vector<8x2xf32> to vector<8x1xf32>
    %184 = arith.addf %132, %183 : vector<8x1xf32>
    %185 = vector.extract_strided_slice %182 {offsets = [0, 1], sizes = [8, 1], strides = [1, 1]} : vector<8x2xf32> to vector<8x1xf32>
    %cst_123 = arith.constant 1.000000e+00 : f32
    %186 = vector.broadcast %cst_123 : f32 to vector<8x1xf32>
    %187 = arith.subf %185, %186 : vector<8x1xf32>
    %188 = math.absf %184 : vector<8x1xf32>
    %cst_124 = arith.constant 5.000000e-01 : f32
    %189 = vector.broadcast %cst_124 : f32 to vector<8x1xf32>
    %190 = arith.mulf %188, %189 : vector<8x1xf32>
    %cst_125 = arith.constant 1.000000e+00 : f32
    %191 = vector.broadcast %cst_125 : f32 to vector<8x1xf32>
    %192 = arith.subf %191, %190 : vector<8x1xf32>
    %cst_126 = arith.constant 0.000000e+00 : f32
    %193 = vector.broadcast %cst_126 : f32 to vector<8x1xf32>
    %194 = arith.maximumf %192, %193 : vector<8x1xf32>
    %195 = math.absf %187 : vector<8x1xf32>
    %cst_127 = arith.constant 5.000000e-01 : f32
    %196 = vector.broadcast %cst_127 : f32 to vector<8x1xf32>
    %197 = arith.mulf %195, %196 : vector<8x1xf32>
    %cst_128 = arith.constant 1.000000e+00 : f32
    %198 = vector.broadcast %cst_128 : f32 to vector<8x1xf32>
    %199 = arith.subf %198, %197 : vector<8x1xf32>
    %cst_129 = arith.constant 0.000000e+00 : f32
    %200 = vector.broadcast %cst_129 : f32 to vector<8x1xf32>
    %201 = arith.maximumf %199, %200 : vector<8x1xf32>
    %202 = arith.mulf %194, %201 : vector<8x1xf32>
    %203 = vector.extract_strided_slice %123 {offsets = [1, 0], sizes = [1, 16], strides = [1, 1]} : vector<2x16xf32> to vector<1x16xf32>
    %204 = vector.broadcast %202 : vector<8x1xf32> to vector<8x16xf32>
    %205 = vector.broadcast %203 : vector<1x16xf32> to vector<8x16xf32>
    %206 = arith.mulf %204, %205 : vector<8x16xf32>
    %207 = arith.addf %169, %206 : vector<8x16xf32>
    %208 = arith.addf %138, %175 : vector<8x16xf32>
    %209 = tpu.concatenate %207, %208 in 1 : vector<8x16xf32>, vector<8x16xf32> -> vector<8x32xf32>
    %cst_130 = arith.constant 5.000000e-01 : f32
    %210 = vector.broadcast %cst_130 : f32 to vector<8x32xf32>
    %211 = arith.mulf %209, %210 : vector<8x32xf32>
    %212 = arith.addf %108, %211 : vector<8x32xf32>
    %cst_131 = arith.constant 5.000000e-01 : f32
    %213 = vector.broadcast %cst_131 : f32 to vector<8x32xf32>
    %214 = arith.mulf %212, %213 : vector<8x32xf32>
    %cst_132 = arith.constant dense<0.000000e+00> : vector<8x16xf32>
    %215 = tpu.matmul %214, %7, %cst_132 {dimension_numbers = #tpu.dot_dimension_numbers<[1], [0], [0], [1], [0, 0, 1, 1], [], []>} : vector<8x32xf32>, vector<32x16xf32>, vector<8x16xf32> -> vector<8x16xf32>
    %216 = vector.broadcast %8 : vector<1x16xf32> to vector<8x16xf32>
    %217 = arith.addf %215, %216 : vector<8x16xf32>
    %cst_133 = arith.constant 0.000000e+00 : f32
    %218 = vector.broadcast %cst_133 : f32 to vector<8x16xf32>
    %219 = arith.maximumf %217, %218 : vector<8x16xf32>
    %cst_134 = arith.constant 0.999994993 : f32
    %220 = vector.broadcast %cst_134 : f32 to vector<8x16xf32>
    %221 = arith.mulf %219, %220 : vector<8x16xf32>
    %cst_135 = arith.constant dense<0.000000e+00> : vector<8x24xf32>
    %222 = tpu.matmul %221, %24, %cst_135 {dimension_numbers = #tpu.dot_dimension_numbers<[1], [0], [0], [1], [0, 0, 1, 1], [], []>} : vector<8x16xf32>, vector<16x24xf32>, vector<8x24xf32> -> vector<8x24xf32>
    %223 = vector.broadcast %25 : vector<1x24xf32> to vector<8x24xf32>
    %224 = arith.addf %222, %223 : vector<8x24xf32>
    %225 = vector.extract_strided_slice %224 {offsets = [0, 0], sizes = [8, 8], strides = [1, 1]} : vector<8x24xf32> to vector<8x8xf32>
    %226 = vector.extract_strided_slice %224 {offsets = [0, 8], sizes = [8, 8], strides = [1, 1]} : vector<8x24xf32> to vector<8x8xf32>
    %227 = vector.extract_strided_slice %224 {offsets = [0, 16], sizes = [8, 8], strides = [1, 1]} : vector<8x24xf32> to vector<8x8xf32>
    %cst_136 = arith.constant dense<0xFF800000> : vector<8xf32>
    %228 = vector.multi_reduction <maximumf>, %225, %cst_136 [0] : vector<8x8xf32> to vector<8xf32>
    %229 = vector.shape_cast %228 : vector<8xf32> to vector<1x8xf32>
    %230 = vector.broadcast %229 : vector<1x8xf32> to vector<8x8xf32>
    %231 = arith.subf %225, %230 : vector<8x8xf32>
    %232 = math.exp %231 : vector<8x8xf32>
    %cst_137 = arith.constant dense<0.000000e+00> : vector<8xf32>
    %233 = vector.multi_reduction <add>, %232, %cst_137 [0] : vector<8x8xf32> to vector<8xf32>
    %234 = vector.shape_cast %233 : vector<8xf32> to vector<1x8xf32>
    %235 = vector.broadcast %234 : vector<1x8xf32> to vector<8x8xf32>
    %236 = arith.divf %232, %235 : vector<8x8xf32>
    %cst_138 = arith.constant dense<0xFF800000> : vector<8xf32>
    %237 = vector.multi_reduction <maximumf>, %226, %cst_138 [1] : vector<8x8xf32> to vector<8xf32>
    %238 = vector.shape_cast %237 : vector<8xf32> to vector<8x1xf32>
    %239 = vector.broadcast %238 : vector<8x1xf32> to vector<8x8xf32>
    %240 = arith.subf %226, %239 : vector<8x8xf32>
    %241 = math.exp %240 : vector<8x8xf32>
    %cst_139 = arith.constant dense<0.000000e+00> : vector<8x8xf32>
    %242 = tpu.matmul %241, %28, %cst_139 {dimension_numbers = #tpu.dot_dimension_numbers<[1], [0], [0], [1], [0, 0, 1, 1], [], []>} : vector<8x8xf32>, vector<8x8xf32>, vector<8x8xf32> -> vector<8x8xf32>
    %243 = arith.divf %241, %242 : vector<8x8xf32>
    %244 = tpu.transpose %236, [1, 0] : vector<8x8xf32> -> vector<8x8xf32>
    %cst_140 = arith.constant dense<0.000000e+00> : vector<8x8xf32>
    %245 = tpu.matmul %244, %227, %cst_140 {dimension_numbers = #tpu.dot_dimension_numbers<[1], [0], [0], [1], [0, 0, 1, 1], [], []>} : vector<8x8xf32>, vector<8x8xf32>, vector<8x8xf32> -> vector<8x8xf32>
    %246 = arith.mulf %245, %28 : vector<8x8xf32>
    %cst_141 = arith.constant dense<0.000000e+00> : vector<8x8xf32>
    %247 = tpu.matmul %243, %246, %cst_141 {dimension_numbers = #tpu.dot_dimension_numbers<[1], [0], [0], [1], [0, 0, 1, 1], [], []>} : vector<8x8xf32>, vector<8x8xf32>, vector<8x8xf32> -> vector<8x8xf32>
    %cst_142 = arith.constant dense<0.000000e+00> : vector<8x16xf32>
    %248 = tpu.matmul %247, %26, %cst_142 {dimension_numbers = #tpu.dot_dimension_numbers<[1], [0], [0], [1], [0, 0, 1, 1], [], []>} : vector<8x8xf32>, vector<8x16xf32>, vector<8x16xf32> -> vector<8x16xf32>
    %249 = vector.broadcast %27 : vector<1x16xf32> to vector<8x16xf32>
    %250 = arith.addf %248, %249 : vector<8x16xf32>
    %251 = arith.addf %250, %221 : vector<8x16xf32>
    %cst_143 = arith.constant dense<0.000000e+00> : vector<8x24xf32>
    %252 = tpu.matmul %4, %24, %cst_143 {dimension_numbers = #tpu.dot_dimension_numbers<[1], [0], [0], [1], [0, 0, 1, 1], [], []>} : vector<8x16xf32>, vector<16x24xf32>, vector<8x24xf32> -> vector<8x24xf32>
    %253 = vector.broadcast %25 : vector<1x24xf32> to vector<8x24xf32>
    %254 = arith.addf %252, %253 : vector<8x24xf32>
    %255 = vector.extract_strided_slice %254 {offsets = [0, 0], sizes = [8, 8], strides = [1, 1]} : vector<8x24xf32> to vector<8x8xf32>
    %256 = vector.extract_strided_slice %254 {offsets = [0, 8], sizes = [8, 8], strides = [1, 1]} : vector<8x24xf32> to vector<8x8xf32>
    %257 = vector.extract_strided_slice %254 {offsets = [0, 16], sizes = [8, 8], strides = [1, 1]} : vector<8x24xf32> to vector<8x8xf32>
    %cst_144 = arith.constant dense<0xFF800000> : vector<8xf32>
    %258 = vector.multi_reduction <maximumf>, %255, %cst_144 [0] : vector<8x8xf32> to vector<8xf32>
    %259 = vector.shape_cast %258 : vector<8xf32> to vector<1x8xf32>
    %260 = vector.broadcast %259 : vector<1x8xf32> to vector<8x8xf32>
    %261 = arith.subf %255, %260 : vector<8x8xf32>
    %262 = math.exp %261 : vector<8x8xf32>
    %cst_145 = arith.constant dense<0.000000e+00> : vector<8xf32>
    %263 = vector.multi_reduction <add>, %262, %cst_145 [0] : vector<8x8xf32> to vector<8xf32>
    %264 = vector.shape_cast %263 : vector<8xf32> to vector<1x8xf32>
    %265 = vector.broadcast %264 : vector<1x8xf32> to vector<8x8xf32>
    %266 = arith.divf %262, %265 : vector<8x8xf32>
    %cst_146 = arith.constant dense<0xFF800000> : vector<8xf32>
    %267 = vector.multi_reduction <maximumf>, %256, %cst_146 [1] : vector<8x8xf32> to vector<8xf32>
    %268 = vector.shape_cast %267 : vector<8xf32> to vector<8x1xf32>
    %269 = vector.broadcast %268 : vector<8x1xf32> to vector<8x8xf32>
    %270 = arith.subf %256, %269 : vector<8x8xf32>
    %271 = math.exp %270 : vector<8x8xf32>
    %cst_147 = arith.constant dense<0.000000e+00> : vector<8x8xf32>
    %272 = tpu.matmul %271, %28, %cst_147 {dimension_numbers = #tpu.dot_dimension_numbers<[1], [0], [0], [1], [0, 0, 1, 1], [], []>} : vector<8x8xf32>, vector<8x8xf32>, vector<8x8xf32> -> vector<8x8xf32>
    %273 = arith.divf %271, %272 : vector<8x8xf32>
    %274 = tpu.transpose %266, [1, 0] : vector<8x8xf32> -> vector<8x8xf32>
    %cst_148 = arith.constant dense<0.000000e+00> : vector<8x8xf32>
    %275 = tpu.matmul %274, %257, %cst_148 {dimension_numbers = #tpu.dot_dimension_numbers<[1], [0], [0], [1], [0, 0, 1, 1], [], []>} : vector<8x8xf32>, vector<8x8xf32>, vector<8x8xf32> -> vector<8x8xf32>
    %276 = arith.mulf %275, %28 : vector<8x8xf32>
    %cst_149 = arith.constant dense<0.000000e+00> : vector<8x8xf32>
    %277 = tpu.matmul %273, %276, %cst_149 {dimension_numbers = #tpu.dot_dimension_numbers<[1], [0], [0], [1], [0, 0, 1, 1], [], []>} : vector<8x8xf32>, vector<8x8xf32>, vector<8x8xf32> -> vector<8x8xf32>
    %cst_150 = arith.constant dense<0.000000e+00> : vector<8x16xf32>
    %278 = tpu.matmul %277, %26, %cst_150 {dimension_numbers = #tpu.dot_dimension_numbers<[1], [0], [0], [1], [0, 0, 1, 1], [], []>} : vector<8x8xf32>, vector<8x16xf32>, vector<8x16xf32> -> vector<8x16xf32>
    %279 = vector.broadcast %27 : vector<1x16xf32> to vector<8x16xf32>
    %280 = arith.addf %278, %279 : vector<8x16xf32>
    %281 = arith.addf %280, %4 : vector<8x16xf32>
    %282 = arith.addf %251, %281 : vector<8x16xf32>
    %cst_151 = arith.constant 5.000000e-01 : f32
    %283 = vector.broadcast %cst_151 : f32 to vector<8x16xf32>
    %284 = arith.mulf %282, %283 : vector<8x16xf32>
    %cst_152 = arith.constant dense<0.000000e+00> : vector<16xf32>
    %285 = vector.multi_reduction <add>, %221, %cst_152 [0] : vector<8x16xf32> to vector<16xf32>
    %286 = vector.shape_cast %285 : vector<16xf32> to vector<1x16xf32>
    %cst_153 = arith.constant 8.000000e+00 : f32
    %287 = vector.broadcast %cst_153 : f32 to vector<1x16xf32>
    %288 = arith.divf %286, %287 : vector<1x16xf32>
    %cst_154 = arith.constant dense<0.000000e+00> : vector<16xf32>
    %289 = vector.multi_reduction <add>, %4, %cst_154 [0] : vector<8x16xf32> to vector<16xf32>
    %290 = vector.shape_cast %289 : vector<16xf32> to vector<1x16xf32>
    %cst_155 = arith.constant 8.000000e+00 : f32
    %291 = vector.broadcast %cst_155 : f32 to vector<1x16xf32>
    %292 = arith.divf %290, %291 : vector<1x16xf32>
    %293 = tpu.concatenate %288, %292 in 0 : vector<1x16xf32>, vector<1x16xf32> -> vector<2x16xf32>
    %cst_156 = arith.constant dense<0.000000e+00> : vector<2x16xf32>
    %294 = tpu.matmul %293, %29, %cst_156 {dimension_numbers = #tpu.dot_dimension_numbers<[1], [0], [0], [1], [0, 0, 1, 1], [], []>} : vector<2x16xf32>, vector<16x16xf32>, vector<2x16xf32> -> vector<2x16xf32>
    %cst_157 = arith.constant 0.999994993 : f32
    %295 = vector.broadcast %cst_157 : f32 to vector<2x16xf32>
    %296 = arith.mulf %294, %295 : vector<2x16xf32>
    %cst_158 = arith.constant dense<0.000000e+00> : vector<2x8xf32>
    %297 = tpu.matmul %296, %30, %cst_158 {dimension_numbers = #tpu.dot_dimension_numbers<[1], [0], [0], [1], [0, 0, 1, 1], [], []>} : vector<2x16xf32>, vector<16x8xf32>, vector<2x8xf32> -> vector<2x8xf32>
    %cst_159 = arith.constant 0.999994993 : f32
    %298 = vector.broadcast %cst_159 : f32 to vector<2x8xf32>
    %299 = arith.mulf %297, %298 : vector<2x8xf32>
    %300 = vector.extract_strided_slice %33 {offsets = [0, 0], sizes = [8, 8], strides = [1, 1]} : vector<16x8xf32> to vector<8x8xf32>
    %301 = vector.extract_strided_slice %33 {offsets = [8, 0], sizes = [8, 8], strides = [1, 1]} : vector<16x8xf32> to vector<8x8xf32>
    %cst_160 = arith.constant dense<0.000000e+00> : vector<2x8xf32>
    %302 = tpu.matmul %299, %301, %cst_160 {dimension_numbers = #tpu.dot_dimension_numbers<[1], [0], [0], [1], [0, 0, 1, 1], [], []>} : vector<2x8xf32>, vector<8x8xf32>, vector<2x8xf32> -> vector<2x8xf32>
    %303 = tpu.iota {dimensions = array<i32: 0>} : vector<8x1xi32>
    %304 = arith.sitofp %303 : vector<8x1xi32> to vector<8x1xf32>
    %cst_161 = arith.constant 0.285714298 : f32
    %305 = vector.broadcast %cst_161 : f32 to vector<8x1xf32>
    %306 = arith.mulf %304, %305 : vector<8x1xf32>
    %cst_162 = arith.constant 1.000000e+00 : f32
    %307 = vector.broadcast %cst_162 : f32 to vector<8x1xf32>
    %308 = arith.subf %306, %307 : vector<8x1xf32>
    %cst_163 = arith.constant dense<0.000000e+00> : vector<8x16xf32>
    %309 = tpu.matmul %221, %31, %cst_163 {dimension_numbers = #tpu.dot_dimension_numbers<[1], [0], [0], [1], [0, 0, 1, 1], [], []>} : vector<8x16xf32>, vector<16x16xf32>, vector<8x16xf32> -> vector<8x16xf32>
    %cst_164 = arith.constant 0.999994993 : f32
    %310 = vector.broadcast %cst_164 : f32 to vector<8x16xf32>
    %311 = arith.mulf %309, %310 : vector<8x16xf32>
    %cst_165 = arith.constant dense<0.000000e+00> : vector<8x8xf32>
    %312 = tpu.matmul %311, %32, %cst_165 {dimension_numbers = #tpu.dot_dimension_numbers<[1], [0], [0], [1], [0, 0, 1, 1], [], []>} : vector<8x16xf32>, vector<16x8xf32>, vector<8x8xf32> -> vector<8x8xf32>
    %cst_166 = arith.constant 0.999994993 : f32
    %313 = vector.broadcast %cst_166 : f32 to vector<8x8xf32>
    %314 = arith.mulf %312, %313 : vector<8x8xf32>
    %cst_167 = arith.constant dense<0.000000e+00> : vector<8x8xf32>
    %315 = tpu.matmul %314, %300, %cst_167 {dimension_numbers = #tpu.dot_dimension_numbers<[1], [0], [0], [1], [0, 0, 1, 1], [], []>} : vector<8x8xf32>, vector<8x8xf32>, vector<8x8xf32> -> vector<8x8xf32>
    %316 = vector.extract_strided_slice %302 {offsets = [0, 0], sizes = [1, 8], strides = [1, 1]} : vector<2x8xf32> to vector<1x8xf32>
    %317 = vector.broadcast %316 : vector<1x8xf32> to vector<8x8xf32>
    %318 = arith.addf %315, %317 : vector<8x8xf32>
    %cst_168 = arith.constant 0.999994993 : f32
    %319 = vector.broadcast %cst_168 : f32 to vector<8x8xf32>
    %320 = arith.mulf %318, %319 : vector<8x8xf32>
    %cst_169 = arith.constant dense<0.000000e+00> : vector<8x2xf32>
    %321 = tpu.matmul %320, %34, %cst_169 {dimension_numbers = #tpu.dot_dimension_numbers<[1], [0], [0], [1], [0, 0, 1, 1], [], []>} : vector<8x8xf32>, vector<8x2xf32>, vector<8x2xf32> -> vector<8x2xf32>
    %322 = vector.extract_strided_slice %321 {offsets = [0, 0], sizes = [8, 1], strides = [1, 1]} : vector<8x2xf32> to vector<8x1xf32>
    %323 = arith.addf %308, %322 : vector<8x1xf32>
    %324 = vector.extract_strided_slice %321 {offsets = [0, 1], sizes = [8, 1], strides = [1, 1]} : vector<8x2xf32> to vector<8x1xf32>
    %cst_170 = arith.constant 1.000000e+00 : f32
    %325 = vector.broadcast %cst_170 : f32 to vector<8x1xf32>
    %326 = arith.subf %324, %325 : vector<8x1xf32>
    %327 = math.absf %323 : vector<8x1xf32>
    %cst_171 = arith.constant 5.000000e-01 : f32
    %328 = vector.broadcast %cst_171 : f32 to vector<8x1xf32>
    %329 = arith.mulf %327, %328 : vector<8x1xf32>
    %cst_172 = arith.constant 1.000000e+00 : f32
    %330 = vector.broadcast %cst_172 : f32 to vector<8x1xf32>
    %331 = arith.subf %330, %329 : vector<8x1xf32>
    %cst_173 = arith.constant 0.000000e+00 : f32
    %332 = vector.broadcast %cst_173 : f32 to vector<8x1xf32>
    %333 = arith.maximumf %331, %332 : vector<8x1xf32>
    %334 = math.absf %326 : vector<8x1xf32>
    %cst_174 = arith.constant 5.000000e-01 : f32
    %335 = vector.broadcast %cst_174 : f32 to vector<8x1xf32>
    %336 = arith.mulf %334, %335 : vector<8x1xf32>
    %cst_175 = arith.constant 1.000000e+00 : f32
    %337 = vector.broadcast %cst_175 : f32 to vector<8x1xf32>
    %338 = arith.subf %337, %336 : vector<8x1xf32>
    %cst_176 = arith.constant 0.000000e+00 : f32
    %339 = vector.broadcast %cst_176 : f32 to vector<8x1xf32>
    %340 = arith.maximumf %338, %339 : vector<8x1xf32>
    %341 = arith.mulf %333, %340 : vector<8x1xf32>
    %342 = vector.extract_strided_slice %299 {offsets = [0, 0], sizes = [1, 8], strides = [1, 1]} : vector<2x8xf32> to vector<1x8xf32>
    %343 = vector.broadcast %341 : vector<8x1xf32> to vector<8x8xf32>
    %344 = vector.broadcast %342 : vector<1x8xf32> to vector<8x8xf32>
    %345 = arith.mulf %343, %344 : vector<8x8xf32>
    %cst_177 = arith.constant dense<0.000000e+00> : vector<8x16xf32>
    %346 = tpu.matmul %4, %31, %cst_177 {dimension_numbers = #tpu.dot_dimension_numbers<[1], [0], [0], [1], [0, 0, 1, 1], [], []>} : vector<8x16xf32>, vector<16x16xf32>, vector<8x16xf32> -> vector<8x16xf32>
    %cst_178 = arith.constant 0.999994993 : f32
    %347 = vector.broadcast %cst_178 : f32 to vector<8x16xf32>
    %348 = arith.mulf %346, %347 : vector<8x16xf32>
    %cst_179 = arith.constant dense<0.000000e+00> : vector<8x8xf32>
    %349 = tpu.matmul %348, %32, %cst_179 {dimension_numbers = #tpu.dot_dimension_numbers<[1], [0], [0], [1], [0, 0, 1, 1], [], []>} : vector<8x16xf32>, vector<16x8xf32>, vector<8x8xf32> -> vector<8x8xf32>
    %cst_180 = arith.constant 0.999994993 : f32
    %350 = vector.broadcast %cst_180 : f32 to vector<8x8xf32>
    %351 = arith.mulf %349, %350 : vector<8x8xf32>
    %cst_181 = arith.constant dense<0.000000e+00> : vector<8x8xf32>
    %352 = tpu.matmul %351, %300, %cst_181 {dimension_numbers = #tpu.dot_dimension_numbers<[1], [0], [0], [1], [0, 0, 1, 1], [], []>} : vector<8x8xf32>, vector<8x8xf32>, vector<8x8xf32> -> vector<8x8xf32>
    %353 = vector.extract_strided_slice %302 {offsets = [1, 0], sizes = [1, 8], strides = [1, 1]} : vector<2x8xf32> to vector<1x8xf32>
    %354 = vector.broadcast %353 : vector<1x8xf32> to vector<8x8xf32>
    %355 = arith.addf %352, %354 : vector<8x8xf32>
    %cst_182 = arith.constant 0.999994993 : f32
    %356 = vector.broadcast %cst_182 : f32 to vector<8x8xf32>
    %357 = arith.mulf %355, %356 : vector<8x8xf32>
    %cst_183 = arith.constant dense<0.000000e+00> : vector<8x2xf32>
    %358 = tpu.matmul %357, %34, %cst_183 {dimension_numbers = #tpu.dot_dimension_numbers<[1], [0], [0], [1], [0, 0, 1, 1], [], []>} : vector<8x8xf32>, vector<8x2xf32>, vector<8x2xf32> -> vector<8x2xf32>
    %359 = vector.extract_strided_slice %358 {offsets = [0, 0], sizes = [8, 1], strides = [1, 1]} : vector<8x2xf32> to vector<8x1xf32>
    %360 = arith.addf %308, %359 : vector<8x1xf32>
    %361 = vector.extract_strided_slice %358 {offsets = [0, 1], sizes = [8, 1], strides = [1, 1]} : vector<8x2xf32> to vector<8x1xf32>
    %cst_184 = arith.constant 1.000000e+00 : f32
    %362 = vector.broadcast %cst_184 : f32 to vector<8x1xf32>
    %363 = arith.subf %361, %362 : vector<8x1xf32>
    %364 = math.absf %360 : vector<8x1xf32>
    %cst_185 = arith.constant 5.000000e-01 : f32
    %365 = vector.broadcast %cst_185 : f32 to vector<8x1xf32>
    %366 = arith.mulf %364, %365 : vector<8x1xf32>
    %cst_186 = arith.constant 1.000000e+00 : f32
    %367 = vector.broadcast %cst_186 : f32 to vector<8x1xf32>
    %368 = arith.subf %367, %366 : vector<8x1xf32>
    %cst_187 = arith.constant 0.000000e+00 : f32
    %369 = vector.broadcast %cst_187 : f32 to vector<8x1xf32>
    %370 = arith.maximumf %368, %369 : vector<8x1xf32>
    %371 = math.absf %363 : vector<8x1xf32>
    %cst_188 = arith.constant 5.000000e-01 : f32
    %372 = vector.broadcast %cst_188 : f32 to vector<8x1xf32>
    %373 = arith.mulf %371, %372 : vector<8x1xf32>
    %cst_189 = arith.constant 1.000000e+00 : f32
    %374 = vector.broadcast %cst_189 : f32 to vector<8x1xf32>
    %375 = arith.subf %374, %373 : vector<8x1xf32>
    %cst_190 = arith.constant 0.000000e+00 : f32
    %376 = vector.broadcast %cst_190 : f32 to vector<8x1xf32>
    %377 = arith.maximumf %375, %376 : vector<8x1xf32>
    %378 = arith.mulf %370, %377 : vector<8x1xf32>
    %379 = vector.extract_strided_slice %299 {offsets = [1, 0], sizes = [1, 8], strides = [1, 1]} : vector<2x8xf32> to vector<1x8xf32>
    %380 = vector.broadcast %378 : vector<8x1xf32> to vector<8x8xf32>
    %381 = vector.broadcast %379 : vector<1x8xf32> to vector<8x8xf32>
    %382 = arith.mulf %380, %381 : vector<8x8xf32>
    %383 = arith.addf %345, %382 : vector<8x8xf32>
    %384 = arith.addf %314, %351 : vector<8x8xf32>
    %385 = tpu.concatenate %383, %384 in 1 : vector<8x8xf32>, vector<8x8xf32> -> vector<8x16xf32>
    %cst_191 = arith.constant 5.000000e-01 : f32
    %386 = vector.broadcast %cst_191 : f32 to vector<8x16xf32>
    %387 = arith.mulf %385, %386 : vector<8x16xf32>
    %388 = arith.addf %284, %387 : vector<8x16xf32>
    %cst_192 = arith.constant 5.000000e-01 : f32
    %389 = vector.broadcast %cst_192 : f32 to vector<8x16xf32>
    %390 = arith.mulf %388, %389 : vector<8x16xf32>
    %cst_193 = arith.constant dense<0.000000e+00> : vector<8x32xf32>
    %391 = tpu.matmul %390, %9, %cst_193 {dimension_numbers = #tpu.dot_dimension_numbers<[1], [0], [0], [1], [0, 0, 1, 1], [], []>} : vector<8x16xf32>, vector<16x32xf32>, vector<8x32xf32> -> vector<8x32xf32>
    %392 = vector.broadcast %10 : vector<1x32xf32> to vector<8x32xf32>
    %393 = arith.addf %391, %392 : vector<8x32xf32>
    %cst_194 = arith.constant 0.000000e+00 : f32
    %394 = vector.broadcast %cst_194 : f32 to vector<8x32xf32>
    %395 = arith.maximumf %393, %394 : vector<8x32xf32>
    %cst_195 = arith.constant 0.999994993 : f32
    %396 = vector.broadcast %cst_195 : f32 to vector<8x32xf32>
    %397 = arith.mulf %395, %396 : vector<8x32xf32>
    %cst_196 = arith.constant dense<0.000000e+00> : vector<8x48xf32>
    %398 = tpu.matmul %397, %11, %cst_196 {dimension_numbers = #tpu.dot_dimension_numbers<[1], [0], [0], [1], [0, 0, 1, 1], [], []>} : vector<8x32xf32>, vector<32x48xf32>, vector<8x48xf32> -> vector<8x48xf32>
    %399 = vector.broadcast %12 : vector<1x48xf32> to vector<8x48xf32>
    %400 = arith.addf %398, %399 : vector<8x48xf32>
    %401 = vector.extract_strided_slice %400 {offsets = [0, 0], sizes = [8, 16], strides = [1, 1]} : vector<8x48xf32> to vector<8x16xf32>
    %402 = vector.extract_strided_slice %400 {offsets = [0, 16], sizes = [8, 16], strides = [1, 1]} : vector<8x48xf32> to vector<8x16xf32>
    %403 = vector.extract_strided_slice %400 {offsets = [0, 32], sizes = [8, 16], strides = [1, 1]} : vector<8x48xf32> to vector<8x16xf32>
    %cst_197 = arith.constant 0.000000e+00 : f32
    %404 = vector.broadcast %cst_197 : f32 to vector<8x16xf32>
    %405 = arith.subf %404, %401 : vector<8x16xf32>
    %406 = math.exp %405 : vector<8x16xf32>
    %cst_198 = arith.constant 1.000000e+00 : f32
    %407 = vector.broadcast %cst_198 : f32 to vector<8x16xf32>
    %408 = arith.addf %407, %406 : vector<8x16xf32>
    %cst_199 = arith.constant 1.000000e+00 : f32
    %409 = vector.broadcast %cst_199 : f32 to vector<8x16xf32>
    %410 = arith.divf %409, %408 : vector<8x16xf32>
    %c0_200 = arith.constant 0 : index
    %c0_201 = arith.constant 0 : index
    %411 = vector.load %arg36[%c0_200, %c0_201] : memref<8x16xf32, #tpu.memory_space<vmem>>, vector<8x16xf32>
    tpu.vector_store %arg36[%c0_200, %c0_201], %410 {strides = array<i32>} : memref<8x16xf32, #tpu.memory_space<vmem>>, vector<8x16xf32>,
    %412 = math.exp %402 : vector<8x16xf32>
    %cst_202 = arith.constant 9.99999974E-6 : f32
    %cst_203 = arith.constant 1.000000e+06 : f32
    %413 = vector.broadcast %cst_202 : f32 to vector<8x16xf32>
    %414 = arith.maximumf %413, %412 : vector<8x16xf32>
    %415 = vector.broadcast %cst_203 : f32 to vector<8x16xf32>
    %416 = arith.minimumf %415, %414 : vector<8x16xf32>
    %c0_204 = arith.constant 0 : index
    %c0_205 = arith.constant 0 : index
    %417 = vector.load %arg37[%c0_204, %c0_205] : memref<8x16xf32, #tpu.memory_space<vmem>>, vector<8x16xf32>
    tpu.vector_store %arg37[%c0_204, %c0_205], %416 {strides = array<i32>} : memref<8x16xf32, #tpu.memory_space<vmem>>, vector<8x16xf32>,
    %cst_206 = arith.constant 0.000000e+00 : f32
    %418 = vector.broadcast %cst_206 : f32 to vector<8x16xf32>
    %419 = arith.maximumf %403, %418 : vector<8x16xf32>
    %420 = math.absf %403 : vector<8x16xf32>
    %cst_207 = arith.constant 0.000000e+00 : f32
    %421 = vector.broadcast %cst_207 : f32 to vector<8x16xf32>
    %422 = arith.subf %421, %420 : vector<8x16xf32>
    %423 = math.exp %422 : vector<8x16xf32>
    %424 = math.log1p %423 : vector<8x16xf32>
    %425 = arith.addf %419, %424 : vector<8x16xf32>
    %cst_208 = arith.constant 9.99999974E-5 : f32
    %cst_209 = arith.constant 1.000000e+04 : f32
    %426 = vector.broadcast %cst_208 : f32 to vector<8x16xf32>
    %427 = arith.maximumf %426, %425 : vector<8x16xf32>
    %428 = vector.broadcast %cst_209 : f32 to vector<8x16xf32>
    %429 = arith.minimumf %428, %427 : vector<8x16xf32>
    %c0_210 = arith.constant 0 : index
    %c0_211 = arith.constant 0 : index
    %430 = vector.load %arg38[%c0_210, %c0_211] : memref<8x16xf32, #tpu.memory_space<vmem>>, vector<8x16xf32>
    tpu.vector_store %arg38[%c0_210, %c0_211], %429 {strides = array<i32>} : memref<8x16xf32, #tpu.memory_space<vmem>>, vector<8x16xf32>,
    return
  }
  func.func @transform_0(%arg0: i32) -> (i32, i32) {
    %c0_i32 = arith.constant 0 : i32
    %c0_i32_0 = arith.constant 0 : i32
    %c0_i32_1 = arith.constant 0 : i32
    return %c0_i32, %c0_i32_0 : i32, i32
  }
  func.func @transform_1(%arg0: i32) -> (i32, i32) {
    %c0_i32 = arith.constant 0 : i32
    %c0_i32_0 = arith.constant 0 : i32
    %c0_i32_1 = arith.constant 0 : i32
    return %c0_i32, %c0_i32_0 : i32, i32
  }
  func.func @transform_2(%arg0: i32) -> (i32, i32) {
    %c0_i32 = arith.constant 0 : i32
    %c0_i32_0 = arith.constant 0 : i32
    %c0_i32_1 = arith.constant 0 : i32
    return %c0_i32, %c0_i32_0 : i32, i32
  }
  func.func @transform_3(%arg0: i32) -> (i32, i32) {
    %c0_i32 = arith.constant 0 : i32
    %c0_i32_0 = arith.constant 0 : i32
    %c0_i32_1 = arith.constant 0 : i32
    return %c0_i32, %c0_i32_0 : i32, i32
  }
  func.func @transform_4(%arg0: i32) -> (i32, i32) {
    %c0_i32 = arith.constant 0 : i32
    %c0_i32_0 = arith.constant 0 : i32
    %c0_i32_1 = arith.constant 0 : i32
    return %c0_i32, %c0_i32_0 : i32, i32
  }
  func.func @transform_5(%arg0: i32) -> (i32, i32) {
    %c0_i32 = arith.constant 0 : i32
    %c0_i32_0 = arith.constant 0 : i32
    %c0_i32_1 = arith.constant 0 : i32
    return %c0_i32, %c0_i32_0 : i32, i32
  }
  func.func @transform_6(%arg0: i32) -> (i32, i32) {
    %c0_i32 = arith.constant 0 : i32
    %c0_i32_0 = arith.constant 0 : i32
    %c0_i32_1 = arith.constant 0 : i32
    return %c0_i32, %c0_i32_0 : i32, i32
  }
  func.func @transform_7(%arg0: i32) -> (i32, i32) {
    %c0_i32 = arith.constant 0 : i32
    %c0_i32_0 = arith.constant 0 : i32
    %c0_i32_1 = arith.constant 0 : i32
    return %c0_i32, %c0_i32_0 : i32, i32
  }
  func.func @transform_8(%arg0: i32) -> (i32, i32) {
    %c0_i32 = arith.constant 0 : i32
    %c0_i32_0 = arith.constant 0 : i32
    %c0_i32_1 = arith.constant 0 : i32
    return %c0_i32, %c0_i32_0 : i32, i32
  }
  func.func @transform_9(%arg0: i32) -> (i32, i32) {
    %c0_i32 = arith.constant 0 : i32
    %c0_i32_0 = arith.constant 0 : i32
    %c0_i32_1 = arith.constant 0 : i32
    return %c0_i32, %c0_i32_0 : i32, i32
  }
  func.func @transform_10(%arg0: i32) -> (i32, i32) {
    %c0_i32 = arith.constant 0 : i32
    %c0_i32_0 = arith.constant 0 : i32
    %c0_i32_1 = arith.constant 0 : i32
    return %c0_i32, %c0_i32_0 : i32, i32
  }
  func.func @transform_11(%arg0: i32) -> (i32, i32) {
    %c0_i32 = arith.constant 0 : i32
    %c0_i32_0 = arith.constant 0 : i32
    %c0_i32_1 = arith.constant 0 : i32
    return %c0_i32, %c0_i32_0 : i32, i32
  }
  func.func @transform_12(%arg0: i32) -> (i32, i32) {
    %c0_i32 = arith.constant 0 : i32
    %c0_i32_0 = arith.constant 0 : i32
    %c0_i32_1 = arith.constant 0 : i32
    return %c0_i32, %c0_i32_0 : i32, i32
  }
  func.func @transform_13(%arg0: i32) -> (i32, i32) {
    %c0_i32 = arith.constant 0 : i32
    %c0_i32_0 = arith.constant 0 : i32
    %c0_i32_1 = arith.constant 0 : i32
    return %c0_i32, %c0_i32_0 : i32, i32
  }
  func.func @transform_14(%arg0: i32) -> (i32, i32) {
    %c0_i32 = arith.constant 0 : i32
    %c0_i32_0 = arith.constant 0 : i32
    %c0_i32_1 = arith.constant 0 : i32
    return %c0_i32, %c0_i32_0 : i32, i32
  }
  func.func @transform_15(%arg0: i32) -> (i32, i32) {
    %c0_i32 = arith.constant 0 : i32
    %c0_i32_0 = arith.constant 0 : i32
    %c0_i32_1 = arith.constant 0 : i32
    return %c0_i32, %c0_i32_0 : i32, i32
  }
  func.func @transform_16(%arg0: i32) -> (i32, i32) {
    %c0_i32 = arith.constant 0 : i32
    %c0_i32_0 = arith.constant 0 : i32
    %c0_i32_1 = arith.constant 0 : i32
    return %c0_i32, %c0_i32_0 : i32, i32
  }
  func.func @transform_17(%arg0: i32) -> (i32, i32) {
    %c0_i32 = arith.constant 0 : i32
    %c0_i32_0 = arith.constant 0 : i32
    %c0_i32_1 = arith.constant 0 : i32
    return %c0_i32, %c0_i32_0 : i32, i32
  }
  func.func @transform_18(%arg0: i32) -> (i32, i32) {
    %c0_i32 = arith.constant 0 : i32
    %c0_i32_0 = arith.constant 0 : i32
    %c0_i32_1 = arith.constant 0 : i32
    return %c0_i32, %c0_i32_0 : i32, i32
  }
  func.func @transform_19(%arg0: i32) -> (i32, i32) {
    %c0_i32 = arith.constant 0 : i32
    %c0_i32_0 = arith.constant 0 : i32
    %c0_i32_1 = arith.constant 0 : i32
    return %c0_i32, %c0_i32_0 : i32, i32
  }
  func.func @transform_20(%arg0: i32) -> (i32, i32) {
    %c0_i32 = arith.constant 0 : i32
    %c0_i32_0 = arith.constant 0 : i32
    %c0_i32_1 = arith.constant 0 : i32
    return %c0_i32, %c0_i32_0 : i32, i32
  }
  func.func @transform_21(%arg0: i32) -> (i32, i32) {
    %c0_i32 = arith.constant 0 : i32
    %c0_i32_0 = arith.constant 0 : i32
    %c0_i32_1 = arith.constant 0 : i32
    return %c0_i32, %c0_i32_0 : i32, i32
  }
  func.func @transform_22(%arg0: i32) -> (i32, i32) {
    %c0_i32 = arith.constant 0 : i32
    %c0_i32_0 = arith.constant 0 : i32
    %c0_i32_1 = arith.constant 0 : i32
    return %c0_i32, %c0_i32_0 : i32, i32
  }
  func.func @transform_23(%arg0: i32) -> (i32, i32) {
    %c0_i32 = arith.constant 0 : i32
    %c0_i32_0 = arith.constant 0 : i32
    %c0_i32_1 = arith.constant 0 : i32
    return %c0_i32, %c0_i32_0 : i32, i32
  }
  func.func @transform_24(%arg0: i32) -> (i32, i32) {
    %c0_i32 = arith.constant 0 : i32
    %c0_i32_0 = arith.constant 0 : i32
    %c0_i32_1 = arith.constant 0 : i32
    return %c0_i32, %c0_i32_0 : i32, i32
  }
  func.func @transform_25(%arg0: i32) -> (i32, i32) {
    %c0_i32 = arith.constant 0 : i32
    %c0_i32_0 = arith.constant 0 : i32
    %c0_i32_1 = arith.constant 0 : i32
    return %c0_i32, %c0_i32_0 : i32, i32
  }
  func.func @transform_26(%arg0: i32) -> (i32, i32) {
    %c0_i32 = arith.constant 0 : i32
    %c0_i32_0 = arith.constant 0 : i32
    %c0_i32_1 = arith.constant 0 : i32
    return %c0_i32, %c0_i32_0 : i32, i32
  }
  func.func @transform_27(%arg0: i32) -> (i32, i32) {
    %c0_i32 = arith.constant 0 : i32
    %c0_i32_0 = arith.constant 0 : i32
    %c0_i32_1 = arith.constant 0 : i32
    return %c0_i32, %c0_i32_0 : i32, i32
  }
  func.func @transform_28(%arg0: i32) -> (i32, i32) {
    %c0_i32 = arith.constant 0 : i32
    %c0_i32_0 = arith.constant 0 : i32
    %c0_i32_1 = arith.constant 0 : i32
    return %c0_i32, %c0_i32_0 : i32, i32
  }
  func.func @transform_29(%arg0: i32) -> (i32, i32) {
    %c0_i32 = arith.constant 0 : i32
    %c0_i32_0 = arith.constant 0 : i32
    %c0_i32_1 = arith.constant 0 : i32
    return %c0_i32, %c0_i32_0 : i32, i32
  }
  func.func @transform_30(%arg0: i32) -> (i32, i32) {
    %c0_i32 = arith.constant 0 : i32
    %c0_i32_0 = arith.constant 0 : i32
    %c0_i32_1 = arith.constant 0 : i32
    return %c0_i32, %c0_i32_0 : i32, i32
  }
  func.func @transform_31(%arg0: i32) -> (i32, i32) {
    %c0_i32 = arith.constant 0 : i32
    %c0_i32_0 = arith.constant 0 : i32
    %c0_i32_1 = arith.constant 0 : i32
    return %c0_i32, %c0_i32_0 : i32, i32
  }
  func.func @transform_32(%arg0: i32) -> (i32, i32) {
    %c0_i32 = arith.constant 0 : i32
    %c0_i32_0 = arith.constant 0 : i32
    %c0_i32_1 = arith.constant 0 : i32
    return %c0_i32, %c0_i32_0 : i32, i32
  }
  func.func @transform_33(%arg0: i32) -> (i32, i32) {
    %c0_i32 = arith.constant 0 : i32
    %c0_i32_0 = arith.constant 0 : i32
    %c0_i32_1 = arith.constant 0 : i32
    return %c0_i32, %c0_i32_0 : i32, i32
  }
  func.func @transform_34(%arg0: i32) -> (i32, i32) {
    %c0_i32 = arith.constant 0 : i32
    %c0_i32_0 = arith.constant 0 : i32
    %c0_i32_1 = arith.constant 0 : i32
    return %c0_i32, %c0_i32_0 : i32, i32
  }
  func.func @transform_35(%arg0: i32) -> (i32, i32) {
    %c0_i32 = arith.constant 0 : i32
    %c0_i32_0 = arith.constant 0 : i32
    %c0_i32_1 = arith.constant 0 : i32
    return %c0_i32, %c0_i32_0 : i32, i32
  }
  func.func @transform_36(%arg0: i32) -> (i32, i32) {
    %c0_i32 = arith.constant 0 : i32
    %c0_i32_0 = arith.constant 0 : i32
    %c0_i32_1 = arith.constant 0 : i32
    return %c0_i32, %c0_i32_0 : i32, i32
  }
  func.func @transform_37(%arg0: i32) -> (i32, i32) {
    %c0_i32 = arith.constant 0 : i32
    %c0_i32_0 = arith.constant 0 : i32
    %c0_i32_1 = arith.constant 0 : i32
    return %c0_i32, %c0_i32_0 : i32, i32
  }
}

</mosaic_0001>

<bundles_post_ra>
// kernel: ae_forward.1
= control target key start
LH: loop header
LB: loop body
LE: loop exit
PB: predicated region body
PF: predicated region fallthrough
CT: control target
= control target key end

     0   :  { %s5367_s6 = smov 1   ;;  %s5368_s10 = smov 2   ;;  %s6070_s0 = inlined_call_operand.smem [shape: u32[38], index: -1, kind: input, shape index: {}] }
   0x1   :  { %s5428_s5 = sld [smem:[%s6070_s0]]   ;;  %s5369_s14 = smov 3  }
   0x2   :  { %s5433_s9 = sld [smem:[%s6070_s0 + %s5367_s6]]   ;;  %s5370_s18 = smov 4  }
   0x3   :  { %s5438_s13 = sld [smem:[%s6070_s0 + %s5368_s10]]   ;;  %s5371_s22 = smov 5  }
   0x4   :  { %s5443_s17 = sld [smem:[%s6070_s0 + %s5369_s14]]   ;;  %s5372_s26 = smov 6  }
   0x5   :  { %s5448_s21 = sld [smem:[%s6070_s0 + %s5370_s18]]   ;;  %s5373_s30 = smov 7  }
   0x6   :  { %s5453_s25 = sld [smem:[%s6070_s0 + %s5371_s22]]   ;;  %s5374_s4 = smov 8  }
   0x7   :  { %s5458_s29 = sld [smem:[%s6070_s0 + %s5372_s26]]   ;;  %s5375_s10 = smov 9  }
   0x8   :  { %s5463_s3 = sld [smem:[%s6070_s0 + %s5373_s30]]   ;;  %s5376_s15 = smov 10  }
   0x9   :  { %s5468_s8 = sld [smem:[%s6070_s0 + %s5374_s4]]   ;;  %s5377_s20 = smov 11  }
   0xa   :  { %s5473_s14 = sld [smem:[%s6070_s0 + %s5375_s10]]   ;;  %s5378_s26 = smov 12  }
   0xb   :  { %6084 = sst [smem:[#allocation16_spill]] %s5448_s21  ;;  %s5379_s1 = smov 13  }
   0xc   :  { %s5478_s19 = sld [smem:[%s6070_s0 + %s5376_s15]]   ;;  %s5380_s7 = smov 14  }
   0xd   :  { %s5483_s24 = sld [smem:[%s6070_s0 + %s5377_s20]]   ;;  %s5381_s15 = smov 15  }
   0xe   :  { %6085 = sst [smem:[#allocation17_spill]] %s5463_s3  ;;  %s5382_s22 = smov 16  }
   0xf   :  { %6086 = sst [smem:[#allocation18_spill]] %s5468_s8  ;;  %s5383_s28 = smov 17  }
  0x10   :  { %6087 = sst [smem:[#allocation19_spill]] %s5473_s14 }
  0x11   :  { %s5488_s30 = sld [smem:[%s6070_s0 + %s5378_s26]]  }
  0x12   :  { %6088 = sst [smem:[#allocation20_spill]] %s5478_s19 }
  0x13   :  { %6089 = sst [smem:[#allocation21_spill]] %s5483_s24 }
  0x14   :  { %s5493_s6 = sld [smem:[%s6070_s0 + %s5379_s1]]  }
  0x15   :  { %s5498_s12 = sld [smem:[%s6070_s0 + %s5380_s7]]   ;;  %s5384_s7 = smov 18  }
  0x16   :  { %s5503_s20 = sld [smem:[%s6070_s0 + %s5381_s15]]   ;;  %s5385_s15 = smov 19  }
  0x17   :  { %6090 = sst [smem:[#allocation22_spill]] %s5488_s30 }
  0x18   :  { %s5508_s27 = sld [smem:[%s6070_s0 + %s5382_s22]]   ;;  %s5386_s22 = smov 20  }
  0x19   :  { %s5513_s4 = sld [smem:[%s6070_s0 + %s5383_s28]]   ;;  %s5387_s28 = smov 21  }
  0x1a   :  { %s5518_s30 = sld [smem:[%s6070_s0 + %s5384_s7]]   ;;  %s5388_s7 = smov 22  }
  0x1b   :  { %s5523_s19 = sld [smem:[%s6070_s0 + %s5385_s15]]   ;;  %s5389_s15 = smov 23  }
  0x1c   :  { %s5528_s24 = sld [smem:[%s6070_s0 + %s5386_s22]]   ;;  %s5390_s22 = smov 24  }
  0x1d   :  { %s5533_s14 = sld [smem:[%s6070_s0 + %s5387_s28]]   ;;  %s5391_s28 = smov 25  }
  0x1e   :  { %s5538_s21 = sld [smem:[%s6070_s0 + %s5388_s7]]   ;;  %s5392_s7 = smov 26  }
  0x1f   :  { %s5543_s8 = sld [smem:[%s6070_s0 + %s5389_s15]]   ;;  %s5393_s15 = smov 27  }
  0x20   :  { %s5548_s3 = sld [smem:[%s6070_s0 + %s5390_s22]]   ;;  %s5394_s22 = smov 28  }
  0x22   :  { %6091 = sst [smem:[#allocation23_spill]] %s5528_s24 }
  0x23   :  { %6092 = sst [smem:[#allocation24_spill]] %s5533_s14 }
  0x24   :  { %6093 = sst [smem:[#allocation25_spill]] %s5538_s21 }
  0x25   :  { %6094 = sst [smem:[#allocation26_spill]] %s5543_s8 }
  0x26   :  { %6095 = sst [smem:[#allocation27_spill]] %s5548_s3 }
  0x27   :  { %s5553_s14 = sld [smem:[%s6070_s0 + %s5391_s28]]   ;;  %s5395_s28 = smov 29  }
  0x28   :  { %s5558_s21 = sld [smem:[%s6070_s0 + %s5392_s7]]   ;;  %s5396_s7 = smov 30  }
  0x29   :  { %s5563_s8 = sld [smem:[%s6070_s0 + %s5393_s15]]   ;;  %s5397_s15 = smov 31  }
  0x2a   :  { %s5568_s3 = sld [smem:[%s6070_s0 + %s5394_s22]]   ;;  %s5398_s22 = smov 32  }
  0x2b   :  { %s5573_s24 = sld [smem:[%s6070_s0 + %s5395_s28]]   ;;  %s5399_s28 = smov 33  }
  0x2e   :  { %6096 = sst [smem:[#allocation28_spill]] %s5558_s21 }
  0x2f   :  { %6097 = sst [smem:[#allocation29_spill]] %s5563_s8 }
  0x30   :  { %6098 = sst [smem:[#allocation30_spill]] %s5568_s3 }
  0x31   :  { %6099 = sst [smem:[#allocation31_spill]] %s5573_s24 }
  0x32   :  { %s5578_s21 = sld [smem:[%s6070_s0 + %s5396_s7]]   ;;  %s5400_s7 = smov 34  }
  0x33   :  { %s5583_s8 = sld [smem:[%s6070_s0 + %s5397_s15]]   ;;  %s5401_s15 = smov 35  }
  0x34   :  { %s5588_s3 = sld [smem:[%s6070_s0 + %s5398_s22]]   ;;  %s5402_s22 = smov 36  }
  0x35   :  { %s5593_s24 = sld [smem:[%s6070_s0 + %s5399_s28]]   ;;  %s5403_s28 = smov 37  }
  0x38   :  { %6100 = sst [smem:[#allocation32_spill]] %s5578_s21 }
  0x39   :  { %6101 = sst [smem:[#allocation33_spill]] %s5583_s8 }
  0x3a   :  { %6102 = sst [smem:[#allocation34_spill]] %s5588_s3 }
  0x3b   :  { %6103 = sst [smem:[#allocation35_spill]] %s5593_s24 }
  0x3c   :  { %s5598_s21 = sld [smem:[%s6070_s0 + %s5400_s7]]  }
  0x3d   :  { %s5603_s8 = sld [smem:[%s6070_s0 + %s5401_s15]]  }
  0x3e   :  { %s5608_s3 = sld [smem:[%s6070_s0 + %s5402_s22]]  }
  0x3f   :  { %s5613_s24 = sld [smem:[%s6070_s0 + %s5403_s28]]  }
  0x40   :  { %81 = vsyncpa [#allocation3], 0 }
  0x41   :  { %82 = vsyncpa [#allocation6], 0 }
  0x42   :  { %83 = vsyncpa [#allocation4], 0 }
  0x43   :  { %84 = vsyncpa [#allocation10], 0  ;;  %s5404_s7 = smov [#allocation5]   ;;  %s5405_s11 = smov [#allocation2]  }
  0x44   :  { %s131_s10 = sshll.u32 %s5404_s7, 4  ;;  %s119_s15 = sshll.u32 %s5405_s11, 4  ;;  %s132_s10 = int_to_ptr.vmem [resolvable:$true] %s131_s10  ;;  %s120_s15 = int_to_ptr.vmem [resolvable:$true] %s119_s15 }
  0x45   :  { %s5227_s16 = scalar_lea.hbm %s5508_s27, 16 }
  0x46   :  { %p5228_p0 = scmp.ne.s32.totalorder %s5508_s27, %s5227_s16  ;;  %p5231_p1 = scmp.lt.u32.totalorder %s5227_s16, %s5508_s27 }
  0x48   :  { %p5233_p2 = pnand %p5231_p1, %p5228_p0 }
  0x4a   :  { %5236 = shalt.err (!%p5233_p2)
}
  0x4b   :  { %s5237_s0 = scalar_lea.vmem %s132_s10, 16  ;;  %s5241_s18 = scalar_lea.vmem %s132_s10, 32 }
  0x4c   :  { %p5238_p3 = scmp.ne.s32.totalorder %s132_s10, %s5237_s0  ;;  %p5242_p4 = scmp.lt.s32.totalorder %s132_s10, %s132_s10 }
  0x4d   :  { %p5243_p5 = scmp.lt.s32.totalorder %s5241_s18, %s5237_s0 }
  0x4f   :  { %p5244_p6 = por %p5243_p5, %p5242_p4 }
  0x51   :  { %p5245_p7 = pnand %p5244_p6, %p5238_p3 }
  0x53   :  { %5248 = shalt.err (!%p5245_p7)
}
  0x54   :  { %134 = dma.hbm_to_vmem [thread:$0]  %s5508_s27, 16, %s132_s10, [#allocation6]  }
  0x55   :  { %s5249_s22 = scalar_lea.hbm %s5498_s12, 16 }
  0x56   :  { %p5250_p8 = scmp.ne.s32.totalorder %s5498_s12, %s5249_s22  ;;  %p5253_p9 = scmp.lt.u32.totalorder %s5249_s22, %s5498_s12 }
  0x58   :  { %p5255_p10 = pnand %p5253_p9, %p5250_p8 }
  0x5a   :  { %5258 = shalt.err (!%p5255_p10)
}
  0x5b   :  { %s5259_s23 = scalar_lea.vmem %s120_s15, 16  ;;  %s5263_s26 = scalar_lea.vmem %s120_s15, 32 }
  0x5c   :  { %p5260_p11 = scmp.ne.s32.totalorder %s120_s15, %s5259_s23  ;;  %p5264_p12 = scmp.lt.s32.totalorder %s120_s15, %s120_s15 }
  0x5d   :  { %p5265_p13 = scmp.lt.s32.totalorder %s5263_s26, %s5259_s23 }
  0x5f   :  { %p5266_p0 = por %p5265_p13, %p5264_p12 }
  0x61   :  { %p5267_p1 = pnand %p5266_p0, %p5260_p11 }
  0x63   :  { %5270 = shalt.err (!%p5267_p1)
}
  0x64   :  { %122 = dma.hbm_to_vmem [thread:$0]  %s5498_s12, 16, %s120_s15, [#allocation3]  }
  0x65   :  { %s5406_s28 = smov [#allocation7]   ;;  %s5271_s1 = scalar_lea.hbm %s5553_s14, 16 }
  0x66   :  { %s157_s27 = sshll.u32 %s5406_s28, 4  ;;  %p5272_p2 = scmp.ne.s32.totalorder %s5553_s14, %s5271_s1  ;;  %s158_s27 = int_to_ptr.vmem [resolvable:$true] %s157_s27 }
  0x67   :  { %p5275_p3 = scmp.lt.u32.totalorder %s5271_s1, %s5553_s14 }
  0x69   :  { %p5277_p4 = pnand %p5275_p3, %p5272_p2 }
  0x6b   :  { %5280 = shalt.err (!%p5277_p4)
}
  0x6c   :  { %s5281_s2 = scalar_lea.vmem %s158_s27, 16  ;;  %s5285_s7 = scalar_lea.vmem %s158_s27, 32 }
  0x6d   :  { %p5282_p5 = scmp.ne.s32.totalorder %s158_s27, %s5281_s2  ;;  %p5286_p6 = scmp.lt.s32.totalorder %s158_s27, %s158_s27 }
  0x6e   :  { %p5287_p7 = scmp.lt.s32.totalorder %s5285_s7, %s5281_s2 }
  0x70   :  { %p5288_p8 = por %p5287_p7, %p5286_p6 }
  0x72   :  { %p5289_p9 = pnand %p5288_p8, %p5282_p5 }
  0x74   :  { %5292 = shalt.err (!%p5289_p9)
}
  0x75   :  { %160 = dma.hbm_to_vmem [thread:$0]  %s5553_s14, 16, %s158_s27, [#allocation6]  }
  0x76   :  { %5359 = dma.done.wait [#allocation3], 16  }
  0x77   :  { %5360 = vsyncadd [#allocation3], 4294967280 }
  0x78   :  { %5361 = dma.done.wait [#allocation6], 32  }
  0x79   :  { %5362 = vsyncadd [#allocation6], 4294967264  ;;  %v5407_v0 = vmov 0.0   ;;  %vm5408_vm0 = vmmov 0   ;;  %v5409_v1 = vmov 0.0|0.0   ;;  %vm259_vm1 = vcmask 64512  }
  0x7a   :  { %4649 = vmatprep.subr.mxu1 %v5407_v0  ;;  %4651 = vmatprep.mubr.msk.f32.mxu1 %vm5408_vm0, %v5407_v0  ;;  %v188_v2 = vld [vmem:[%s5428_s5] sm:$0xff]  ;;  %v191_v5 = vld [vmem:[%s5438_s13 + $0x8] sm:$0xff]  ;;  %vm333_vm2 = vcmask 130048   ;;  %v212_v18 = vld [vmem:[%s5493_s6 + $0x10] sm:$0xff]  ;;  %vm495_vm3 = vcmask 261120   ;;  %vm588_vm4 = vcmask 261248  }
  0x7b   :  { %4996 = vmatprep.subr.bf16.mxu0 %v5409_v1  ;;  %4665 = vmatprep.mubr.msk.f32.mxu0 %vm5408_vm0, %v5407_v0  ;;  %v189_v3 = vld [vmem:[%s5433_s9] sm:$0xff]  ;;  %v195_v10 = vld [vmem:[%s5453_s25 + $0x8] sm:$0xff]  ;;  %v213_v19 = vld [vmem:[%s5493_s6 + $0x18] sm:$0xff]  ;;  %s5410_s5 = smov 96   ;;  %s5411_s9 = smov 112   ;;  %vm1416_vm5 = vcmask 1040384  }
  0x7c   :  { %v190_v4 = vld [vmem:[%s5438_s13] sm:$0xff]  ;;  %4650 = vmatpush3.msra.mxu1 %v188_v2  ;;  %v211_v16 = vld [vmem:[%s5493_s6 + $0x8] sm:$0xff]  ;;  %v5659_v20 = vpack.c.bf16 %v213_v19, %v212_v18  ;;  %s5412_s13 = smov 16   ;;  %s6107_s14 = sld [smem:[#allocation26_spill]]  ;;  %vm2475_vm6 = vcmask 130112  }
  0x7d   :  { %4652 = vmatmul.mubr.msk.f32.vlgmr.msra.gmra.mrb[0].mxu1 %vm259_vm1, %v189_v3  ;;  %4993 = vmatprep.subr.bf16.mxu1 %v5409_v1  ;;  %v4994_v6 = vpack.c.bf16 %v191_v5, %v190_v4  ;;  %v194_v9 = vld [vmem:[%s5453_s25] sm:$0xff]  ;;  %v5674_v28 = vld [vmem:[%s5513_s4 + $0x8] sm:$0xff]  ;;  %s6105_s25 = sld [smem:[#allocation25_spill]]  ;;  %s6110_s12 = sld [smem:[#allocation18_spill]] }
  0x7e   :  { %4658 = vmatprep.mubr.msk.f32.mxu1 %vm5408_vm0, %v5407_v0  ;;  %v4997_v11 = vpack.c.bf16 %v195_v10, %v194_v9  ;;  %v210_v15 = vld [vmem:[%s5493_s6] sm:$0xff]  ;;  %v216_v9 = vld [vmem:[%s5503_s20 + $0x8] sm:$0xff]  ;;  %s6109_s6 = sld [smem:[#allocation27_spill]]  ;;  %s5416_s10 = smov 8  }
  0x7f   :  { %4995 = vmatpush3.bf16.msra.mxu1 %v4994_v6  ;;  %v5653_v17 = vpack.c.bf16 %v211_v16, %v210_v15  ;;  %v4438_v21 = vld [vmem:[%s5458_s29] ss:$0 sm:$0xff]  ;;  %s6106_s29 = sld [smem:[#allocation24_spill]]  ;;  %s6113_s15 = sld [smem:[#allocation28_spill]] }
  0x80   :  { %4999 = vmatprep.subr.bf16.mxu1 %v5409_v1  ;;  %4998 = vmatpush3.bf16.msra.mxu0 %v4997_v11  ;;  %v5671_v27 = vld [vmem:[%s5513_s4] sm:$0xff]  ;;  %s5415_s4 = smov 120   ;;  %s6112_s11 = sld [smem:[#allocation16_spill]] }
  0x81   :  { %5005 = vmatprep.subr.bf16.mxu0 %v5409_v1  ;;  %v5678_v29 = vpack.c.bf16 %v5674_v28, %v5671_v27  ;;  %v5681_v30 = vld [vmem:[#allocation2] ss:$0 sm:$0xff]  ;;  %s6114_s16 = sld [smem:[#allocation31_spill]]  ;;  %s6115_s0 = sld [smem:[#allocation32_spill]] }
  0x82   :  { %s6116_s18 = sld [smem:[#allocation33_spill]]  ;;  %s6117_s22 = sld [smem:[#allocation35_spill]] }
  0x83   :  { %s6118_s23 = sld [smem:[#allocation34_spill]]  ;;  %s6120_s26 = sld [smem:[#allocation29_spill]] }
  0x84   :  { %s6121_s28 = sld [smem:[#allocation21_spill]]  ;;  %s6122_s27 = sld [smem:[#allocation20_spill]] }
  0x85   :  { %s6123_s1 = sld [smem:[#allocation22_spill]]  ;;  %s5417_s2 = smov [#allocation8]  }
  0x86   :  { %s4362_s7 = sshll.u32 %s5417_s2, 4  ;;  %s4363_s7 = int_to_ptr.vmem [resolvable:$true] %s4362_s7 }
  0x87   :  { %p5298_p11 = scmp.lt.s32.totalorder %s4363_s7, %s4363_s7 }
 0x150   :  { %v329_v7 = vpop.f32.mrb[0].mxu1 }
 0x151   :  { %v4653_v8 = vpop.f32.mrb[1].mxu1  ;;  %4659 = vmatmul.mubr.msk.f32.vlgmr.msra.gmra.mrb[2].mxu1 %vm333_vm2, %v329_v7 }
 0x152   :  { %4676 = vmatprep.mubr.msk.f32.mxu1 %vm5408_vm0, %v5407_v0  ;;  %5001 = vmatpush3.bf16.msra.mxu1 %v5653_v17  ;;  %v215_v8 = vld [vmem:[%s5503_s20] sm:$0xff]  ;;  %s6111_s20 = sld [smem:[#allocation30_spill]] }
 0x153   :  { %5002 = vmatprep.subr.bf16.mxu1 %v5409_v1  ;;  %v5701_v10 = vpack.c.bf16 %v216_v9, %v215_v8  ;;  %v221_v8 = vld [vmem:[%s5518_s30 + $0x8] sm:$0xff] }
 0x156   :  { %5004 = vmatpush3.bf16.msra.mxu1 %v5659_v20 }
 0x157   :  { %5008 = vmatprep.subr.bf16.mxu1 %v5409_v1 }
 0x224   :  { %v403_v12 = vpop.f32.mrb[2].mxu1 }
 0x225   :  { %v407_v13 = vmax.f32 %v403_v12, 0.0  ;;  %v4660_v14 = vpop.f32.mrb[3].mxu1 }
 0x226   :  { %v5714_v14 = vld [vmem:[%s5443_s17] sm:$0xff]  ;;  %s6104_s17 = sld [smem:[#allocation23_spill]] }
 0x227   :  { %4666 = vmatmul.mubr.msk.f32.vlgmr.msra.gmra.mrb[0].mxu0 %vm333_vm2, %v407_v13 }
 0x228   :  { %4683 = vmatprep.mubr.msk.f32.mxu0 %vm5408_vm0, %v5407_v0  ;;  %5007 = vmatpush3.bf16.msra.mxu0 %v5678_v29 }
 0x2fa   :  { %v483_v22 = vpop.f32.mrb[0].mxu0 }
 0x2fb   :  { %v484_v23 = vadd.f32 %v4438_v21, %v483_v22  ;;  %v4667_v24 = vpop.f32.mrb[1].mxu0 }
 0x2fd   :  { %v487_v25 = vmax.f32 %v484_v23, 0.0 }
 0x2ff   :  { %v5664_v26 = vmul.f32 0.999995, %v487_v25 }
 0x301   :  { %4677 = vmatmul.mubr.msk.f32.vlgmr.msra.gmra.mrb[4].mxu1 %vm495_vm3, %v5664_v26 }
 0x302   :  { %4695 = vmatprep.mubr.msk.f32.mxu1 %vm5408_vm0, %v5407_v0 }
 0x3d4   :  { %v565_v31 = vpop.f32.mrb[4].mxu1 }
 0x3d5   :  { %v566_v32 = vadd.f32 %v5681_v30, %v565_v31  ;;  %v4678_v33 = vpop.f32.mrb[5].mxu1 }
 0x3d7   :  { %v569_v34 = vsel %vm333_vm2, %v566_v32, -inf  ;;  %709 = vrot.lane.b32.xlu1 %v566_v32, %s5410_s5  ;;  %v589_v35 = vsel %vm588_vm4, %v566_v32, -inf }
 0x3d8   :  { %v570_v36 = vrot.slane %v569_v34, 4  ;;  %590 = vmax.xlane.f32.xlu0 %v589_v35 }
 0x3da   :  { %v571_v37 = vmax.f32 %v569_v34, %v570_v36 }
 0x3dc   :  { %v572_v38 = vrot.slane %v571_v37, 2 }
 0x3de   :  { %v573_v39 = vmax.f32 %v571_v37, %v572_v38 }
 0x3e0   :  { %v574_v40 = vrot.slane %v573_v39, 1 }
 0x3e2   :  { %v575_v41 = vmax.f32 %v573_v39, %v574_v40 }
 0x3e4   :  { %v576_v42 = vsub.f32 %v566_v32, %v575_v41 }
 0x3e6   :  { %v577_v43 = vmul.f32 1.442695, %v576_v42 }
 0x3e8   :  { %5185 = vpow2.f32 %v577_v43 }
 0x3f2   :  { %v5186_v44 = vpop.eup %5185 }
 0x3f3   :  { %v579_v45 = vsel %vm333_vm2, %v5186_v44, 0.0 }
 0x3f4   :  { %v580_v46 = vrot.slane %v579_v45, 4 }
 0x3f6   :  { %v581_v47 = vadd.f32 %v580_v46, %v579_v45 }
 0x3f8   :  { %v582_v48 = vrot.slane %v581_v47, 2 }
 0x3fa   :  { %v583_v49 = vadd.f32 %v582_v48, %v581_v47 }
 0x3fc   :  { %v584_v50 = vrot.slane %v583_v49, 1 }
 0x3fe   :  { %v585_v51 = vadd.f32 %v584_v50, %v583_v49 }
 0x400   :  { %5187 = vrcp.f32 %v585_v51 }
 0x40a   :  { %v5188_v52 = vpop.eup %5187 }
 0x40b   :  { %v587_v53 = vmul.f32 %v5188_v52, %v5186_v44 }
 0x40d   :  { %676 = vxpose.xlu1.b32.start.end [1/1] (short) (narrow) %v587_v53, 16 }
 0x449   :  { %v710_v54 = vpop.permute.xlu1 %709 }
 0x44a   :  { %4686 = vmatprep.subr.mxu0 %v710_v54 }
 0x465   :  { %v591_v55 = vpop.xlane.xlu0 %590 }
 0x466   :  { %v592_v56 = vsub.f32 %v566_v32, %v591_v55 }
 0x468   :  { %v593_v57 = vmul.f32 1.442695, %v592_v56 }
 0x46a   :  { %5189 = vpow2.f32 %v593_v57 }
 0x474   :  { %v5190_v58 = vpop.eup %5189 }
 0x475   :  { %596 = vrot.lane.b32.xlu0 %v5190_v58, %s5411_s9 }
 0x48d   :  { %v692_v60 = vpop.trf.xlu1 }
 0x491   :  { %v693_v61 = vpop.trf.xlu1 }
 0x4e7   :  { %v597_v59 = vpop.permute.xlu0 %596 }
 0x4e8   :  { %4684 = vmatmul.mubr.msk.f32.vlgmr.msra.gmra.mrb[2].mxu0 %vm333_vm2, %v597_v59 }
 0x4e9   :  { %4687 = vmatpush3.msra.mxu0 %v710_v54  ;;  %4688 = vmatprep.mubr.msk.f32.mxu0 %vm259_vm1, %v692_v60 }
 0x4ea   :  { %5011 = vmatprep.subr.bf16.mxu0 %v5409_v1 }
 0x4ec   :  { %4689 = vmatmul.mubr.msk.f32.vlgmr.msra.gmra.mrb[4].mxu0 %vm259_vm1, %v693_v61  ;;  %v1399_v61 = vsel %vm495_vm3, %v5664_v26, 0.0 }
 0x4ed   :  { %4702 = vmatprep.mubr.msk.f32.mxu0 %vm5408_vm0, %v5407_v0  ;;  %5013 = vmatpush3.bf16.msra.mxu0 %v5701_v10 }
 0x4ee   :  { %5020 = vmatprep.subr.bf16.mxu0 %v5409_v1 }
 0x5bb   :  { %v666_v62 = vpop.f32.mrb[2].mxu0 }
 0x5bc   :  { %671 = vrot.lane.b32.xlu0 %v666_v62, %s5412_s13  ;;  %v4685_v63 = vpop.f32.mrb[3].mxu0 }
 0x5bf   :  { %v4690_v2 = vpop.f32.mrb[4].mxu0 }
 0x5c0   :  { %v794_v3 = vmul.f32 %v4690_v2, %v5674_v28  ;;  %v784_v4 = vpop.f32.mrb[5].mxu0 }
 0x5c1   :  { %v793_v5 = vmul.f32 %v784_v4, %v5671_v27 }
 0x5c3   :  { %v5009_v6 = vpack.c.bf16 %v794_v3, %v793_v5 }
 0x5c5   :  { %5010 = vmatpush3.bf16.msra.mxu1 %v5009_v6 }
 0x5c6   :  { %5014 = vmatprep.subr.bf16.mxu1 %v5409_v1 }
 0x62e   :  { %v672_v7 = vpop.permute.xlu0 %671 }
 0x62f   :  { %5191 = vrcp.f32 %v672_v7  ;;  %v220_v7 = vld [vmem:[%s5518_s30] sm:$0xff] }
 0x639   :  { %v5192_v11 = vpop.eup %5191 }
 0x63a   :  { %v675_v12 = vmul.f32 %v5192_v11, %v5190_v58  ;;  %v5030_v11 = vpack.c.bf16 %v221_v8, %v220_v7 }
 0x63c   :  { %796 = vrot.lane.b32.xlu0 %v675_v12, %s5411_s9  ;;  %v222_v12 = vld [vmem:[%s5518_s30 + $0x10] sm:$0xff] }
 0x6ae   :  { %v797_v13 = vpop.permute.xlu0 %796 }
 0x6af   :  { %4696 = vmatmul.mubr.msk.f32.vlgmr.msra.gmra.mrb[6].mxu1 %vm333_vm2, %v797_v13  ;;  %v223_v13 = vld [vmem:[%s5518_s30 + $0x18] sm:$0xff]  ;;  %s6108_s30 = sld [smem:[#allocation17_spill]] }
 0x6b0   :  { %5016 = vmatpush3.bf16.msra.mxu1 %v5653_v17  ;;  %4713 = vmatprep.mubr.msk.f32.mxu1 %vm5408_vm0, %v5407_v0 }
 0x6b1   :  { %5017 = vmatprep.subr.bf16.mxu1 %v5409_v1 }
 0x6b4   :  { %5019 = vmatpush3.bf16.msra.mxu1 %v5659_v20 }
 0x6b5   :  { %5023 = vmatprep.subr.bf16.mxu1 %v5409_v1 }
 0x6b7   :  { %4714 = vmatmul.mubr.msk.f32.vlgmr.msra.gmra.mrb[8].mxu1 %vm495_vm3, %v5714_v14 }
 0x6b8   :  { %4732 = vmatprep.mubr.msk.f32.mxu1 %vm5408_vm0, %v5407_v0 }
 0x782   :  { %v866_v15 = vpop.f32.mrb[6].mxu1 }
 0x783   :  { %v4697_v16 = vpop.f32.mrb[7].mxu1  ;;  %4703 = vmatmul.mubr.msk.f32.vlgmr.msra.gmra.mrb[6].mxu0 %vm333_vm2, %v866_v15 }
 0x784   :  { %5022 = vmatpush3.bf16.msra.mxu0 %v5678_v29  ;;  %4720 = vmatprep.mubr.msk.f32.mxu0 %vm5408_vm0, %v5407_v0 }
 0x78a   :  { %v1019_v17 = vpop.f32.mrb[8].mxu1 }
 0x78b   :  { %v1020_v18 = vadd.f32 %v5681_v30, %v1019_v17  ;;  %v4715_v19 = vpop.f32.mrb[9].mxu1 }
 0x78d   :  { %v1042_v20 = vsel %vm588_vm4, %v1020_v18, -inf  ;;  %v1023_v21 = vsel %vm333_vm2, %v1020_v18, -inf }
 0x78e   :  { %1043 = vmax.xlane.f32.xlu0 %v1042_v20  ;;  %v1024_v22 = vrot.slane %v1023_v21, 4 }
 0x790   :  { %v1025_v23 = vmax.f32 %v1023_v21, %v1024_v22  ;;  %v224_v22 = vld [vmem:[%s5523_s19] sm:$0xff] }
 0x792   :  { %v1026_v24 = vrot.slane %v1025_v23, 2 }
 0x794   :  { %v1027_v25 = vmax.f32 %v1025_v23, %v1026_v24  ;;  %v225_v23 = vld [vmem:[%s5523_s19 + $0x8] sm:$0xff] }
 0x795   :  { %v5036_v24 = vpack.c.bf16 %v225_v23, %v224_v22 }
 0x796   :  { %v1028_v31 = vrot.slane %v1027_v25, 1 }
 0x798   :  { %v1029_v29 = vmax.f32 %v1027_v25, %v1028_v31  ;;  %v226_v25 = vld [vmem:[%s5523_s19 + $0x10] sm:$0xff]  ;;  %v227_v31 = vld [vmem:[%s5523_s19 + $0x18] sm:$0xff]  ;;  %s5413_s19 = smov 127  }
 0x79a   :  { %v1030_v32 = vsub.f32 %v1020_v18, %v1029_v29 }
 0x79c   :  { %v1031_v33 = vmul.f32 1.442695, %v1030_v32 }
 0x79e   :  { %5193 = vpow2.f32 %v1031_v33  ;;  %v5039_v33 = vpack.c.bf16 %v227_v31, %v226_v25 }
 0x7a4   :  { %1162 = vrot.lane.b32.xlu0 %v1020_v18, %s5410_s5 }
 0x7a8   :  { %v5194_v37 = vpop.eup %5193 }
 0x7a9   :  { %v1033_v39 = vsel %vm333_vm2, %v5194_v37, 0.0 }
 0x7aa   :  { %v1034_v40 = vrot.slane %v1033_v39, 4 }
 0x7ac   :  { %v1035_v41 = vadd.f32 %v1034_v40, %v1033_v39  ;;  %v230_v39 = vld [vmem:[%s6104_s17 + $0x10] sm:$0xff]  ;;  %v231_v40 = vld [vmem:[%s6104_s17 + $0x18] sm:$0xff] }
 0x7ae   :  { %v1036_v42 = vrot.slane %v1035_v41, 2 }
 0x7b0   :  { %v1037_v43 = vadd.f32 %v1036_v42, %v1035_v41  ;;  %v5048_v41 = vpack.c.bf16 %v231_v40, %v230_v39  ;;  %v238_v42 = vld [vmem:[%s6105_s25 + $0x10] sm:$0xff] }
 0x7b2   :  { %v1038_v44 = vrot.slane %v1037_v43, 1 }
 0x7b4   :  { %v1039_v45 = vadd.f32 %v1038_v44, %v1037_v43  ;;  %v239_v43 = vld [vmem:[%s6105_s25 + $0x18] sm:$0xff] }
 0x7b5   :  { %v5042_v44 = vpack.c.bf16 %v239_v43, %v238_v42 }
 0x81b   :  { %v1044_v34 = vpop.xlane.xlu0 %1043 }
 0x81c   :  { %v1045_v35 = vsub.f32 %v1020_v18, %v1044_v34  ;;  %v5033_v18 = vpack.c.bf16 %v223_v13, %v222_v12  ;;  %v228_v34 = vld [vmem:[%s6104_s17] sm:$0xff] }
 0x81e   :  { %v1046_v30 = vmul.f32 1.442695, %v1045_v35  ;;  %v229_v35 = vld [vmem:[%s6104_s17 + $0x8] sm:$0xff] }
 0x81f   :  { %v1163_v36 = vpop.permute.xlu0 %1162 }
 0x820   :  { %5195 = vpow2.f32 %v1046_v30  ;;  %4723 = vmatprep.subr.mxu0 %v1163_v36 }
 0x821   :  { %5197 = vrcp.f32 %v1039_v45 }
 0x82a   :  { %v5196_v38 = vpop.eup %5195 }
 0x82b   :  { %1049 = vrot.lane.b32.xlu1 %v5196_v38, %s5411_s9  ;;  %v5198_v46 = vpop.eup %5197 }
 0x82c   :  { %v1041_v47 = vmul.f32 %v5198_v46, %v5194_v37 }
 0x854   :  { %1129 = vxpose.xlu1.b32.start.end [1/1] (short) (narrow) %v1041_v47, 16  ;;  %v232_v47 = vld [vmem:[%s6106_s29] sm:$0xff] }
 0x89d   :  { %v1050_v48 = vpop.permute.xlu1 %1049 }
 0x89e   :  { %4721 = vmatmul.mubr.msk.f32.vlgmr.msra.gmra.mrb[8].mxu0 %vm333_vm2, %v1050_v48  ;;  %v233_v48 = vld [vmem:[%s6106_s29 + $0x8] sm:$0xff] }
 0x89f   :  { %4724 = vmatpush3.msra.mxu0 %v1163_v36  ;;  %v5045_v36 = vpack.c.bf16 %v229_v35, %v228_v34 }
 0x8a0   :  { %5026 = vmatprep.subr.bf16.mxu0 %v5409_v1 }
 0x8d4   :  { %v1145_v49 = vpop.trf.xlu1 }
 0x8d5   :  { %4725 = vmatprep.mubr.msk.f32.mxu0 %vm259_vm1, %v1145_v49 }
 0x8d8   :  { %v1146_v50 = vpop.trf.xlu1 }
 0x8d9   :  { %4726 = vmatmul.mubr.msk.f32.vlgmr.msra.gmra.mrb[10].mxu0 %vm259_vm1, %v1146_v50  ;;  %v5051_v50 = vpack.c.bf16 %v233_v48, %v232_v47 }
 0x8da   :  { %5028 = vmatpush3.bf16.msra.mxu0 %v5701_v10  ;;  %4739 = vmatprep.mubr.msk.f32.mxu0 %vm5408_vm0, %v5407_v0 }
 0x8db   :  { %5035 = vmatprep.subr.bf16.mxu0 %v5409_v1 }
 0x971   :  { %v1119_v51 = vpop.f32.mrb[8].mxu0 }
 0x972   :  { %1124 = vrot.lane.b32.xlu0 %v1119_v51, %s5412_s13  ;;  %v4722_v52 = vpop.f32.mrb[9].mxu0 }
 0x9ac   :  { %v4727_v53 = vpop.f32.mrb[10].mxu0 }
 0x9ad   :  { %v1247_v54 = vmul.f32 %v4727_v53, %v5674_v28  ;;  %v1237_v55 = vpop.f32.mrb[11].mxu0  ;;  %v1400_v28 = vrot.slane %v1399_v61, 4  ;;  %v234_v53 = vld [vmem:[%s6106_s29 + $0x10] sm:$0xff] }
 0x9ae   :  { %v1246_v56 = vmul.f32 %v1237_v55, %v5671_v27  ;;  %v1408_v27 = vsel %vm495_vm3, %v5714_v14, 0.0 }
 0x9af   :  { %v1409_v62 = vrot.slane %v1408_v27, 4  ;;  %v1401_v63 = vadd.f32 %v1400_v28, %v1399_v61 }
 0x9b0   :  { %v5024_v57 = vpack.c.bf16 %v1247_v54, %v1246_v56  ;;  %v235_v54 = vld [vmem:[%s6106_s29 + $0x18] sm:$0xff] }
 0x9b1   :  { %v1410_v2 = vadd.f32 %v1409_v62, %v1408_v27  ;;  %v1402_v3 = vrot.slane %v1401_v63, 2  ;;  %v5054_v55 = vpack.c.bf16 %v235_v54, %v234_v53 }
 0x9b2   :  { %5025 = vmatpush3.bf16.msra.mxu1 %v5024_v57 }
 0x9b3   :  { %5029 = vmatprep.subr.bf16.mxu1 %v5409_v1  ;;  %v1411_v4 = vrot.slane %v1410_v2, 2  ;;  %v1403_v5 = vadd.f32 %v1402_v3, %v1401_v63  ;;  %v240_v3 = vld [vmem:[%s6107_s14] sm:$0xff] }
 0x9b5   :  { %v1412_v6 = vadd.f32 %v1411_v4, %v1410_v2  ;;  %v1404_v9 = vrot.slane %v1403_v5, 1  ;;  %v241_v4 = vld [vmem:[%s6107_s14 + $0x8] sm:$0xff] }
 0x9b7   :  { %v1413_v10 = vrot.slane %v1412_v6, 1  ;;  %v1405_v16 = vadd.f32 %v1404_v9, %v1403_v5  ;;  %v5060_v5 = vpack.c.bf16 %v241_v4, %v240_v3 }
 0x9b9   :  { %v1414_v17 = vadd.f32 %v1413_v10, %v1412_v6  ;;  %v1407_v19 = vmul.f32 0.125, %v1405_v16  ;;  %v1639_v6 = vlaneseq }
 0x9bb   :  { %v1415_v20 = vmul.f32 0.125, %v1414_v17  ;;  %v1640_v7 = vshrl.u32 %v1639_v6, 7  ;;  %v200_v6 = vld [vmem:[%s6108_s30 + $0x18] sm:$0xff] }
 0x9bd   :  { %v1417_v21 = vsel %vm1416_vm5, %v1407_v19, %v1415_v20  ;;  %v5821_v8 = vsub.s32 0, %v1640_v7 }
 0x9e4   :  { %v1125_v58 = vpop.permute.xlu0 %1124 }
 0x9e5   :  { %5199 = vrcp.f32 %v1125_v58 }
 0x9ef   :  { %v5200_v59 = vpop.eup %5199 }
 0x9f0   :  { %v1128_v60 = vmul.f32 %v5200_v59, %v5196_v38  ;;  %v236_v59 = vld [vmem:[%s6105_s25] sm:$0xff] }
 0x9f2   :  { %1249 = vrot.lane.b32.xlu0 %v1128_v60, %s5411_s9  ;;  %v237_v60 = vld [vmem:[%s6105_s25 + $0x8] sm:$0xff] }
 0x9f3   :  { %v5057_v61 = vpack.c.bf16 %v237_v60, %v236_v59 }
 0xa64   :  { %v1250_v15 = vpop.permute.xlu0 %1249 }
 0xa65   :  { %4733 = vmatmul.mubr.msk.f32.vlgmr.msra.gmra.mrb[10].mxu1 %vm333_vm2, %v1250_v15 }
 0xa66   :  { %5031 = vmatpush3.bf16.msra.mxu1 %v5030_v11  ;;  %4750 = vmatprep.mubr.msk.f32.mxu1 %vm5408_vm0, %v5407_v0 }
 0xa67   :  { %5032 = vmatprep.subr.bf16.mxu1 %v5409_v1 }
 0xa6a   :  { %5034 = vmatpush3.bf16.msra.mxu1 %v5033_v18 }
 0xa6b   :  { %5041 = vmatprep.subr.bf16.mxu1 %v5409_v1 }
 0xa6d   :  { %4751 = vmatmul.mubr.msk.f32.vlgmr.msra.gmra.mrb[12].mxu1 %vm495_vm3, %v1417_v21 }
 0xa6e   :  { %4768 = vmatprep.mubr.msk.f32.mxu1 %vm5408_vm0, %v5407_v0  ;;  %5043 = vmatpush3.bf16.msra.mxu1 %v5042_v44 }
 0xa6f   :  { %5050 = vmatprep.subr.bf16.mxu1 %v5409_v1 }
 0xb38   :  { %v1319_v29 = vpop.f32.mrb[10].mxu1 }
 0xb39   :  { %v4734_v32 = vpop.f32.mrb[11].mxu1  ;;  %4740 = vmatmul.mubr.msk.f32.vlgmr.msra.gmra.mrb[6].mxu0 %vm333_vm2, %v1319_v29 }
 0xb3a   :  { %5037 = vmatpush3.bf16.msra.mxu0 %v5036_v24  ;;  %4761 = vmatprep.mubr.msk.f32.mxu0 %vm5408_vm0, %v5407_v0  ;;  %v5837_v32 = vsub.s32 1, %v1640_v7 }
 0xb3b   :  { %5038 = vmatprep.subr.bf16.mxu0 %v5409_v1 }
 0xb3e   :  { %5040 = vmatpush3.bf16.msra.mxu0 %v5039_v33 }
 0xb3f   :  { %5044 = vmatprep.subr.bf16.mxu0 %v5409_v1 }
 0xb40   :  { %v1487_v30 = vpop.f32.mrb[12].mxu1 }
 0xb41   :  { %v1491_v37 = vmul.f32 0.999995, %v1487_v30  ;;  %v4752_v38 = vpop.f32.mrb[13].mxu1 }
 0xb42   :  { %v1641_v38 = vcvt.s32.f32 %v1640_v7 }
 0xb43   :  { %4762 = vmatmul.mubr.msk.f32.vlgmr.msra.gmra.mrb[12].mxu0 %vm495_vm3, %v1491_v37  ;;  %v5414_v37 = vmov 0  }
 0xb44   :  { %5046 = vmatpush3.bf16.msra.mxu0 %v5045_v36  ;;  %4779 = vmatprep.mubr.msk.f32.mxu0 %vm5408_vm0, %v5407_v0  ;;  %v1642_v39 = vmul.f32 0.2857143, %v1641_v38 }
 0xb45   :  { %5047 = vmatprep.subr.bf16.mxu0 %v5409_v1  ;;  %5184 = vset.pattern.permute.xlu0 %v5414_v37 }
 0xb46   :  { %v5843_v40 = vadd.f32 -1.0, %v1642_v39 }
 0xb48   :  { %5049 = vmatpush3.bf16.msra.mxu0 %v5048_v41 }
 0xb49   :  { %5056 = vmatprep.subr.bf16.mxu0 %v5409_v1 }
 0xb4b   :  { %4780 = vmatmul.mubr.msk.f32.vlgmr.msra.gmra.mrb[14].mxu0 %vm495_vm3, %v5664_v26 }
 0xb4c   :  { %4797 = vmatprep.mubr.msk.f32.mxu0 %vm5408_vm0, %v5407_v0  ;;  %5058 = vmatpush3.bf16.msra.mxu0 %v5057_v61 }
 0xb4d   :  { %5062 = vmatprep.subr.bf16.mxu0 %v5409_v1 }
 0xc0c   :  { %v5785_v45 = vpop.f32.mrb[6].mxu0 }
 0xc0d   :  { %v4741_v46 = vpop.f32.mrb[7].mxu0 }
 0xc16   :  { %v1561_v49 = vpop.f32.mrb[12].mxu0 }
 0xc17   :  { %v5789_v51 = vmul.f32 0.999995, %v1561_v49  ;;  %v4763_v52 = vpop.f32.mrb[13].mxu0 }
 0xc19   :  { %4769 = vmatmul.mubr.msk.f32.vlgmr.msra.gmra.mrb[14].mxu1 %vm333_vm2, %v5789_v51 }
 0xc1a   :  { %5052 = vmatpush3.bf16.msra.mxu1 %v5051_v50  ;;  %4790 = vmatprep.mubr.msk.f32.mxu1 %vm5408_vm0, %v5407_v0 }
 0xc1b   :  { %5053 = vmatprep.subr.bf16.mxu1 %v5409_v1 }
 0xc1e   :  { %v1710_v56 = vpop.f32.mrb[14].mxu0  ;;  %5055 = vmatpush3.bf16.msra.mxu1 %v5054_v55 }
 0xc1f   :  { %v1714_v57 = vmul.f32 0.999995, %v1710_v56  ;;  %v4781_v58 = vpop.f32.mrb[15].mxu0  ;;  %5059 = vmatprep.subr.bf16.mxu1 %v5409_v1 }
 0xc21   :  { %4791 = vmatmul.mubr.msk.f32.vlgmr.msra.gmra.mrb[16].mxu1 %vm495_vm3, %v1714_v57 }
 0xc22   :  { %4804 = vmatprep.mubr.msk.f32.mxu1 %vm5408_vm0, %v5407_v0  ;;  %5061 = vmatpush3.bf16.msra.mxu1 %v5060_v5 }
 0xc23   :  { %5068 = vmatprep.subr.bf16.mxu1 %v5409_v1 }
 0xcec   :  { %v1635_v27 = vpop.f32.mrb[14].mxu1 }
 0xced   :  { %v4770_v28 = vpop.f32.mrb[15].mxu1  ;;  %v1792_v9 = vrot.slane %v1635_v27, %v5821_v8  ;;  %v2113_v33 = vrot.slane %v1635_v27, %v5837_v32 }
 0xcf4   :  { %v1784_v62 = vpop.f32.mrb[16].mxu1 }
 0xcf5   :  { %v5805_v63 = vmul.f32 0.999995, %v1784_v62  ;;  %v4792_v2 = vpop.f32.mrb[17].mxu1  ;;  %v197_v62 = vld [vmem:[%s6108_s30] sm:$0xff] }
 0xcf6   :  { %v198_v2 = vld [vmem:[%s6108_s30 + $0x8] sm:$0xff] }
 0xcf7   :  { %4798 = vmatmul.mubr.msk.f32.vlgmr.msra.gmra.mrb[16].mxu0 %vm333_vm2, %v5805_v63  ;;  %v5081_v4 = vpack.c.bf16 %v198_v2, %v197_v62 }
 0xcf8   :  { %5064 = vmatpush3.bf16.msra.mxu0 %v5045_v36  ;;  %4815 = vmatprep.mubr.msk.f32.mxu0 %vm5408_vm0, %v5407_v0 }
 0xcf9   :  { %5065 = vmatprep.subr.bf16.mxu0 %v5409_v1 }
 0xcfc   :  { %5067 = vmatpush3.bf16.msra.mxu0 %v5048_v41 }
 0xcfd   :  { %5074 = vmatprep.subr.bf16.mxu0 %v5409_v1 }
 0xcff   :  { %4816 = vmatmul.mubr.msk.f32.vlgmr.msra.gmra.mrb[18].mxu0 %vm495_vm3, %v5714_v14 }
 0xd00   :  { %5076 = vmatpush3.bf16.msra.mxu0 %v5057_v61  ;;  %4833 = vmatprep.mubr.msk.f32.mxu0 %vm5408_vm0, %v5407_v0 }
 0xd01   :  { %5080 = vmatprep.subr.bf16.mxu0 %v5409_v1 }
 0xdca   :  { %v1862_v10 = vpop.f32.mrb[16].mxu0 }
 0xdcb   :  { %v1863_v11 = vadd.f32 %v1862_v10, %v1792_v9  ;;  %v4799_v12 = vpop.f32.mrb[17].mxu0  ;;  %v4446_v9 = vld [vmem:[#allocation5] ss:$0 sm:$0xff] }
 0xdcc   :  { %v5119_v10 = vadd.f32 %v4446_v9, %v5714_v14 }
 0xdcd   :  { %v1866_v13 = vmul.f32 0.999995, %v1863_v11 }
 0xdce   :  { %v5120_v11 = vadd.f32 %v5119_v10, %v4446_v9 }
 0xdcf   :  { %4805 = vmatmul.mubr.msk.f32.vlgmr.msra.gmra.mrb[18].mxu1 %vm333_vm2, %v1866_v13  ;;  %v2284_v13 = vrot.slane %v5789_v51, %v5837_v32 }
 0xdd0   :  { %5070 = vmatpush3.bf16.msra.mxu1 %v5051_v50  ;;  %4826 = vmatprep.mubr.msk.f32.mxu1 %vm5408_vm0, %v5407_v0 }
 0xdd1   :  { %5071 = vmatprep.subr.bf16.mxu1 %v5409_v1 }
 0xdd2   :  { %v2031_v15 = vpop.f32.mrb[18].mxu0 }
 0xdd3   :  { %v2035_v16 = vmul.f32 0.999995, %v2031_v15  ;;  %v4817_v17 = vpop.f32.mrb[19].mxu0  ;;  %v5121_v15 = vadd.f32 %v5120_v11, %v5664_v26  ;;  %v242_v26 = vld [vmem:[%s6109_s6] sm:$0xff] }
 0xdd4   :  { %5073 = vmatpush3.bf16.msra.mxu1 %v5054_v55 }
 0xdd5   :  { %5077 = vmatprep.subr.bf16.mxu1 %v5409_v1 }
 0xdd7   :  { %4827 = vmatmul.mubr.msk.f32.vlgmr.msra.gmra.mrb[20].mxu1 %vm495_vm3, %v2035_v16 }
 0xdd8   :  { %5079 = vmatpush3.bf16.msra.mxu1 %v5060_v5  ;;  %4840 = vmatprep.mubr.msk.f32.mxu1 %vm5408_vm0, %v5407_v0  ;;  %v199_v5 = vld [vmem:[%s6108_s30 + $0x10] sm:$0xff] }
 0xdd9   :  { %5086 = vmatprep.subr.bf16.mxu1 %v5409_v1  ;;  %v5084_v7 = vpack.c.bf16 %v200_v6, %v199_v5 }
 0xea2   :  { %v1936_v18 = vpop.f32.mrb[18].mxu1 }
 0xea3   :  { %v4462_v19 = vadd.f32 -1.0, %v1936_v18  ;;  %v4806_v20 = vpop.f32.mrb[19].mxu1  ;;  %v1940_v41 = vadd.f32 %v5843_v40, %v1936_v18 }
 0xea5   :  { %v1946_v21 = vand.u32 2147483647, %v4462_v19  ;;  %v1942_v42 = vand.u32 2147483647, %v1940_v41  ;;  %v5122_v19 = vadd.f32 %v5121_v15, %v5785_v45  ;;  %v4468_v45 = vld [vmem:[%s6110_s12] ss:$0 sm:$0xff] }
 0xea7   :  { %v1947_v22 = vmul.f32 0.5, %v1946_v21  ;;  %v1943_v47 = vmul.f32 0.5, %v1942_v42  ;;  %v5886_v42 = vld [vmem:[%s6111_s20] sm:$0xff] }
 0xea9   :  { %v1948_v23 = vsub.f32 1.0, %v1947_v22  ;;  %v1944_v50 = vsub.f32 1.0, %v1943_v47  ;;  %v1398_v22 = vmul.f32 0.5, %v5122_v19  ;;  %v5917_v19 = vld [vmem:[%s6113_s15] sm:$0xff] }
 0xeaa   :  { %v2105_v24 = vpop.f32.mrb[20].mxu1 }
 0xeab   :  { %v1949_v25 = vmax.f32 %v1948_v23, 0.0  ;;  %v2109_v31 = vmul.f32 0.999995, %v2105_v24  ;;  %v4828_v29 = vpop.f32.mrb[21].mxu1  ;;  %v1945_v55 = vmax.f32 %v1944_v50, 0.0 }
 0xead   :  { %4834 = vmatmul.mubr.msk.f32.vlgmr.msra.gmra.mrb[20].mxu0 %vm333_vm2, %v2109_v31  ;;  %1951 = vrot.lane.b32.xlu0 %v1949_v25, %s5413_s19  ;;  %v2287_v3 = vadd.f32 %v2109_v31, %v5805_v63  ;;  %v1963_v63 = vrot.slane %v5789_v51, %v5821_v8  ;;  %v243_v51 = vld [vmem:[%s6109_s6 + $0x8] sm:$0xff] }
 0xeae   :  { %4851 = vmatprep.mubr.msk.f32.mxu0 %vm5408_vm0, %v5407_v0  ;;  %5082 = vmatpush3.bf16.msra.mxu0 %v5081_v4  ;;  %v5869_v31 = vpack.c.bf16 %v243_v51, %v242_v26 }
 0xeaf   :  { %5083 = vmatprep.subr.bf16.mxu0 %v5409_v1 }
 0xeb2   :  { %5085 = vmatpush3.bf16.msra.mxu0 %v5084_v7 }
 0xeb3   :  { %4866 = vmatprep.subr.mxu0 %v5407_v0 }
 0xf1f   :  { %v1952_v54 = vpop.permute.xlu0 %1951 }
 0xf20   :  { %v1954_v56 = vmul.f32 %v1952_v54, %v1945_v55 }
 0xf80   :  { %v2183_v34 = vpop.f32.mrb[20].mxu0 }
 0xf81   :  { %v2184_v35 = vadd.f32 %v2183_v34, %v2113_v33  ;;  %v4835_v30 = vpop.f32.mrb[21].mxu0 }
 0xf83   :  { %v2187_v36 = vmul.f32 0.999995, %v2184_v35 }
 0xf85   :  { %4841 = vmatmul.mubr.msk.f32.vlgmr.msra.gmra.mrb[22].mxu1 %vm333_vm2, %v2187_v36  ;;  %v5880_v36 = vld [vmem:[#allocation7] ss:$0 sm:$0xff] }
 0xf86   :  { %4858 = vmatprep.mubr.msk.f32.mxu1 %vm5408_vm0, %v5407_v0  ;;  %5088 = vmatpush3.bf16.msra.mxu1 %v5869_v31 }
 0xf87   :  { %4861 = vmatprep.subr.mxu1 %v5407_v0 }
0x1058   :  { %v2257_v43 = vpop.f32.mrb[22].mxu1 }
0x1059   :  { %v4467_v44 = vadd.f32 -1.0, %v2257_v43  ;;  %v4842_v46 = vpop.f32.mrb[23].mxu1  ;;  %v2261_v57 = vadd.f32 %v5843_v40, %v2257_v43 }
0x105b   :  { %v2267_v48 = vand.u32 2147483647, %v4467_v44  ;;  %v2263_v58 = vand.u32 2147483647, %v2261_v57 }
0x105d   :  { %v2268_v49 = vmul.f32 0.5, %v2267_v48  ;;  %v2264_v59 = vmul.f32 0.5, %v2263_v58 }
0x105f   :  { %v2269_v52 = vsub.f32 1.0, %v2268_v49  ;;  %v2265_v60 = vsub.f32 1.0, %v2264_v59 }
0x1061   :  { %v2270_v53 = vmax.f32 %v2269_v52, 0.0  ;;  %v2266_v61 = vmax.f32 %v2265_v60, 0.0 }
0x1063   :  { %2272 = vrot.lane.b32.xlu0 %v2270_v53, %s5413_s19 }
0x1067   :  { %1957 = vperm.xlu0 %5184, %v1954_v56  }
0x10d5   :  { %v2273_v27 = vpop.permute.xlu0 %2272 }
0x10d6   :  { %v2275_v28 = vmul.f32 %v2273_v27, %v2266_v61 }
0x10d8   :  { %2278 = vperm.xlu0 %5184, %v2275_v28  }
0x10dc   :  { %2289 = vrot.lane.b32.xlu0 %v2287_v3, %s5412_s13  ;;  %s5293_s13 = scalar_lea.vmem %s4363_s7, 128 }
0x10dd   :  { %p5294_p10 = scmp.ne.s32.totalorder %s4363_s7, %s5293_s13  ;;  %p5299_p12 = scmp.lt.s32.totalorder %s5293_s13, %s5293_s13 }
0x10df   :  { %p5300_p13 = por %p5299_p12, %p5298_p11 }
0x10e1   :  { %p5301_p0 = pnand %p5300_p13, %p5294_p10 }
0x10e6   :  { %v1958_v12 = vpop.permute.xlu0 %1957 }
0x10e7   :  { %v1964_v17 = vmul.f32 %v1963_v63, %v1958_v12 }
0x1157   :  { %v2279_v16 = vpop.permute.xlu0 %2278 }
0x1158   :  { %v2285_v18 = vmul.f32 %v2284_v13, %v2279_v16 }
0x115a   :  { %v2286_v20 = vadd.f32 %v2285_v18, %v1964_v17  ;;  %v5910_v18 = vld [vmem:[%s6112_s11] sm:$0xff] }
0x115b   :  { %v2290_v14 = vpop.permute.xlu0 %2289 }
0x115c   :  { %v2292_v21 = vsel %vm333_vm2, %v2286_v20, %v2290_v14 }
0x115d   :  { %v2293_v23 = vmul.f32 0.5, %v2292_v21 }
0x115f   :  { %v2294_v24 = vadd.f32 %v2293_v23, %v1398_v22 }
0x1161   :  { %v2295_v25 = vmul.f32 0.5, %v2294_v24 }
0x1163   :  { %4852 = vmatmul.mubr.msk.f32.vlgmr.msra.gmra.mrb[22].mxu0 %vm495_vm3, %v2295_v25 }
0x1164   :  { %4868 = vmatprep.mubr.msk.f32.mxu0 %vm5408_vm0, %v5407_v0 }
0x1236   :  { %v2371_v29 = vpop.f32.mrb[22].mxu0 }
0x1237   :  { %v2372_v33 = vadd.f32 %v4468_v45, %v2371_v29  ;;  %v4853_v34 = vpop.f32.mrb[23].mxu0 }
0x1239   :  { %v2375_v35 = vmax.f32 %v2372_v33, 0.0 }
0x123b   :  { %v5874_v30 = vmul.f32 0.999995, %v2375_v35 }
0x123d   :  { %4859 = vmatmul.mubr.msk.f32.vlgmr.msra.gmra.mrb[24].mxu1 %vm333_vm2, %v5874_v30 }
0x123e   :  { %4863 = vmatprep.mubr.msk.f32.mxu1 %vm5408_vm0, %v5407_v0  ;;  %4862 = vmatpush3.msra.mxu1 %v5886_v42 }
0x123f   :  { %4871 = vmatprep.subr.mxu1 %v5407_v0 }
0x1310   :  { %v2452_v37 = vpop.f32.mrb[24].mxu1 }
0x1311   :  { %v2453_v38 = vadd.f32 %v5880_v36, %v2452_v37  ;;  %v4860_v39 = vpop.f32.mrb[25].mxu1 }
0x1313   :  { %v2476_v41 = vsel %vm2475_vm6, %v2453_v38, -inf  ;;  %v2456_v43 = vsel %vm259_vm1, %v2453_v38, -inf }
0x1314   :  { %2477 = vmax.xlane.f32.xlu0 %v2476_v41  ;;  %v2457_v44 = vrot.slane %v2456_v43, 4 }
0x1316   :  { %v2458_v46 = vmax.f32 %v2456_v43, %v2457_v44 }
0x1318   :  { %v2459_v47 = vrot.slane %v2458_v46, 2 }
0x131a   :  { %v2460_v48 = vmax.f32 %v2458_v46, %v2459_v47 }
0x131c   :  { %v2461_v49 = vrot.slane %v2460_v48, 1 }
0x131e   :  { %v2462_v50 = vmax.f32 %v2460_v48, %v2461_v49 }
0x1320   :  { %v2463_v52 = vsub.f32 %v2453_v38, %v2462_v50 }
0x1322   :  { %v2464_v53 = vmul.f32 1.442695, %v2463_v52 }
0x1324   :  { %5201 = vpow2.f32 %v2464_v53 }
0x132a   :  { %2596 = vrot.lane.b32.xlu0 %v2453_v38, %s5411_s9 }
0x132e   :  { %v5202_v58 = vpop.eup %5201 }
0x132f   :  { %v2466_v60 = vsel %vm259_vm1, %v5202_v58, 0.0 }
0x1330   :  { %v2467_v61 = vrot.slane %v2466_v60, 4 }
0x1332   :  { %v2468_v27 = vadd.f32 %v2467_v61, %v2466_v60 }
0x1334   :  { %v2469_v28 = vrot.slane %v2468_v27, 2 }
0x1336   :  { %v2470_v62 = vadd.f32 %v2469_v28, %v2468_v27 }
0x1338   :  { %v2471_v2 = vrot.slane %v2470_v62, 1 }
0x133a   :  { %v2472_v3 = vadd.f32 %v2471_v2, %v2470_v62 }
0x13a1   :  { %v2478_v54 = vpop.xlane.xlu0 %2477 }
0x13a2   :  { %v2479_v55 = vsub.f32 %v2453_v38, %v2478_v54 }
0x13a4   :  { %v2480_v56 = vmul.f32 1.442695, %v2479_v55 }
0x13a5   :  { %v2597_v57 = vpop.permute.xlu0 %2596 }
0x13a6   :  { %5203 = vpow2.f32 %v2480_v56  ;;  %4867 = vmatpush3.msra.mxu0 %v2597_v57  ;;  %v3268_v56 = vsel %vm333_vm2, %v5874_v30, 0.0  ;;  %v3276_v57 = vsel %vm333_vm2, %v5910_v18, 0.0 }
0x13a7   :  { %4876 = vmatprep.subr.mxu0 %v5407_v0  ;;  %5205 = vrcp.f32 %v2472_v3 }
0x13b0   :  { %v5204_v59 = vpop.eup %5203 }
0x13b1   :  { %2483 = vrot.lane.b32.xlu1 %v5204_v59, %s5415_s4  ;;  %v5206_v4 = vpop.eup %5205 }
0x13b2   :  { %v2474_v5 = vmul.f32 %v5206_v4, %v5202_v58  ;;  %v3269_v58 = vrot.slane %v3268_v56, 4 }
0x13b4   :  { %v3270_v60 = vadd.f32 %v3269_v58, %v3268_v56  ;;  %v258_v58 = vld [vmem:[%s5598_s21] sm:$0xff]  ;;  %s6119_s21 = sld [smem:[#allocation19_spill]] }
0x13b6   :  { %v3271_v27 = vrot.slane %v3270_v60, 2 }
0x13b8   :  { %v3272_v62 = vadd.f32 %v3271_v27, %v3270_v60 }
0x13ba   :  { %v3273_v3 = vrot.slane %v3272_v62, 1 }
0x13da   :  { %2563 = vxpose.xlu1.b32.start.end [1/1] (short) (narrow) %v2474_v5, 8  ;;  %v248_v5 = vld [vmem:[%s6114_s16] sm:$0xff] }
0x1423   :  { %v2484_v6 = vpop.permute.xlu1 %2483 }
0x1424   :  { %4864 = vmatmul.mubr.msk.f32.vlgmr.msra.gmra.mrb[26].mxu1 %vm259_vm1, %v2484_v6  ;;  %v249_v6 = vld [vmem:[%s6114_s16 + $0x8] sm:$0xff] }
0x1425   :  { %4873 = vmatprep.mubr.msk.f32.mxu1 %vm5408_vm0, %v5407_v0 }
0x145a   :  { %v2579_v7 = vpop.trf.xlu1 }
0x145b   :  { %4869 = vmatmul.mubr.msk.f32.vlgmr.msra.gmra.mrb[24].mxu0 %vm259_vm1, %v2579_v7  ;;  %v3274_v7 = vadd.f32 %v3273_v3, %v3272_v62 }
0x145c   :  { %4878 = vmatprep.mubr.msk.f32.mxu0 %vm5408_vm0, %v5407_v0  ;;  %4877 = vmatpush3.msra.mxu0 %v5917_v19 }
0x145d   :  { %4888 = vmatprep.subr.mxu0 %v5407_v0 }
0x14f7   :  { %v2553_v9 = vpop.f32.mrb[26].mxu1 }
0x14f8   :  { %2558 = vrot.lane.b32.xlu0 %v2553_v9, %s5416_s10  ;;  %v4865_v10 = vpop.f32.mrb[27].mxu1 }
0x14f9   :  { %v5093_v10 = vpack.c.bf16 %v249_v6, %v248_v5 }
0x152e   :  { %v2668_v11 = vpop.f32.mrb[24].mxu0 }
0x152f   :  { %v2672_v12 = vmul.f32 %v2668_v11, %v5886_v42  ;;  %v4870_v63 = vpop.f32.mrb[25].mxu0 }
0x1531   :  { %4872 = vmatpush3.msra.mxu1 %v2672_v12  ;;  %v3275_v12 = vmul.f32 0.125, %v3274_v7 }
0x1532   :  { %5089 = vmatprep.subr.bf16.mxu1 %v5409_v1 }
0x156a   :  { %v2559_v13 = vpop.permute.xlu0 %2558 }
0x156b   :  { %5207 = vrcp.f32 %v2559_v13 }
0x1575   :  { %v5208_v15 = vpop.eup %5207 }
0x1576   :  { %v2562_v16 = vmul.f32 %v5208_v15, %v5204_v59  ;;  %v3277_v59 = vrot.slane %v3276_v57, 4  ;;  %v250_v15 = vld [vmem:[%s6115_s0] sm:$0xff] }
0x1578   :  { %2674 = vrot.lane.b32.xlu0 %v2562_v16, %s5415_s4  ;;  %v3278_v61 = vadd.f32 %v3277_v59, %v3276_v57  ;;  %v251_v16 = vld [vmem:[%s6115_s0 + $0x8] sm:$0xff] }
0x157a   :  { %v3279_v28 = vrot.slane %v3278_v61, 2 }
0x157c   :  { %v3280_v2 = vadd.f32 %v3279_v28, %v3278_v61 }
0x157e   :  { %v3281_v4 = vrot.slane %v3280_v2, 1 }
0x1580   :  { %v3282_v9 = vadd.f32 %v3281_v4, %v3280_v2 }
0x1582   :  { %v3283_v63 = vmul.f32 0.125, %v3282_v9 }
0x1584   :  { %v3284_v13 = vsel %vm1416_vm5, %v3275_v12, %v3283_v63 }
0x15ea   :  { %v2675_v17 = vpop.permute.xlu0 %2674 }
0x15eb   :  { %4874 = vmatmul.mubr.msk.f32.vlgmr.msra.gmra.mrb[28].mxu1 %vm259_vm1, %v2675_v17  ;;  %v5096_v17 = vpack.c.bf16 %v251_v16, %v250_v15 }
0x15ec   :  { %5091 = vmatpush3.bf16.msra.mxu1 %v5869_v31  ;;  %4885 = vmatprep.mubr.msk.f32.mxu1 %vm5408_vm0, %v5407_v0 }
0x15ed   :  { %4893 = vmatprep.subr.mxu1 %v5407_v0 }
0x15ef   :  { %4886 = vmatmul.mubr.msk.f32.vlgmr.msra.gmra.mrb[30].mxu1 %vm333_vm2, %v5910_v18 }
0x15f0   :  { %4895 = vmatprep.mubr.msk.f32.mxu1 %vm5408_vm0, %v5407_v0 }
0x16be   :  { %v2744_v20 = vpop.f32.mrb[28].mxu1 }
0x16bf   :  { %v4875_v14 = vpop.f32.mrb[29].mxu1  ;;  %4879 = vmatmul.mubr.msk.f32.vlgmr.msra.gmra.mrb[26].mxu0 %vm259_vm1, %v2744_v20 }
0x16c0   :  { %4889 = vmatpush3.msra.mxu0 %v5886_v42  ;;  %4890 = vmatprep.mubr.msk.f32.mxu0 %vm5408_vm0, %v5407_v0 }
0x16c1   :  { %4898 = vmatprep.subr.mxu0 %v5407_v0 }
0x16c2   :  { %v2897_v21 = vpop.f32.mrb[30].mxu1 }
0x16c3   :  { %v2898_v22 = vadd.f32 %v5880_v36, %v2897_v21  ;;  %v4887_v23 = vpop.f32.mrb[31].mxu1 }
0x16c5   :  { %v2920_v24 = vsel %vm2475_vm6, %v2898_v22, -inf  ;;  %v2901_v25 = vsel %vm259_vm1, %v2898_v22, -inf }
0x16c6   :  { %2921 = vmax.xlane.f32.xlu0 %v2920_v24  ;;  %v2902_v26 = vrot.slane %v2901_v25, 4  ;;  %v252_v24 = vld [vmem:[%s6116_s18] sm:$0xff] }
0x16c8   :  { %v2903_v51 = vmax.f32 %v2901_v25, %v2902_v26  ;;  %v253_v25 = vld [vmem:[%s6116_s18 + $0x8] sm:$0xff] }
0x16ca   :  { %v2904_v31 = vrot.slane %v2903_v51, 2 }
0x16cc   :  { %v2905_v45 = vmax.f32 %v2903_v51, %v2904_v31  ;;  %v5099_v51 = vpack.c.bf16 %v253_v25, %v252_v24 }
0x16ce   :  { %v2906_v29 = vrot.slane %v2905_v45, 1 }
0x16d0   :  { %v2907_v33 = vmax.f32 %v2905_v45, %v2906_v29 }
0x16d2   :  { %v2908_v34 = vsub.f32 %v2898_v22, %v2907_v33 }
0x16d4   :  { %v2909_v35 = vmul.f32 1.442695, %v2908_v34 }
0x16d6   :  { %5209 = vpow2.f32 %v2909_v35 }
0x16dc   :  { %3040 = vrot.lane.b32.xlu0 %v2898_v22, %s5411_s9 }
0x16e0   :  { %v5210_v41 = vpop.eup %5209 }
0x16e1   :  { %v2911_v44 = vsel %vm259_vm1, %v5210_v41, 0.0 }
0x16e2   :  { %v2912_v46 = vrot.slane %v2911_v44, 4 }
0x16e4   :  { %v2913_v47 = vadd.f32 %v2912_v46, %v2911_v44  ;;  %v255_v44 = vld [vmem:[%s6118_s23 + $0x8] sm:$0xff] }
0x16e6   :  { %v2914_v48 = vrot.slane %v2913_v47, 2 }
0x16e8   :  { %v2915_v49 = vadd.f32 %v2914_v48, %v2913_v47 }
0x16ea   :  { %v2916_v50 = vrot.slane %v2915_v49, 1 }
0x16ec   :  { %v2917_v52 = vadd.f32 %v2916_v50, %v2915_v49  ;;  %v256_v49 = vld [vmem:[%s6117_s22] sm:$0xff] }
0x1753   :  { %v2922_v37 = vpop.xlane.xlu0 %2921 }
0x1754   :  { %v2923_v38 = vsub.f32 %v2898_v22, %v2922_v37 }
0x1756   :  { %v2924_v36 = vmul.f32 1.442695, %v2923_v38 }
0x1757   :  { %v3041_v39 = vpop.permute.xlu0 %3040 }
0x1758   :  { %5211 = vpow2.f32 %v2924_v36  ;;  %4894 = vmatpush3.msra.mxu1 %v3041_v39  ;;  %v257_v39 = vld [vmem:[%s6117_s22 + $0x8] sm:$0xff] }
0x1759   :  { %5092 = vmatprep.subr.bf16.mxu1 %v5409_v1  ;;  %5213 = vrcp.f32 %v2917_v52 }
0x1762   :  { %v5931_v43 = vpop.eup %5211 }
0x1763   :  { %2927 = vrot.lane.b32.xlu1 %v5931_v43, %s5415_s4  ;;  %v5214_v53 = vpop.eup %5213 }
0x1764   :  { %v2919_v54 = vmul.f32 %v5214_v53, %v5210_v41  ;;  %v254_v41 = vld [vmem:[%s6118_s23] sm:$0xff] }
0x178c   :  { %3007 = vxpose.xlu1.b32.start.end [1/1] (short) (narrow) %v2919_v54, 8 }
0x17d5   :  { %v2928_v55 = vpop.permute.xlu1 %2927 }
0x17d6   :  { %4891 = vmatmul.mubr.msk.f32.vlgmr.msra.gmra.mrb[28].mxu0 %vm259_vm1, %v2928_v55 }
0x17d7   :  { %4900 = vmatprep.mubr.msk.f32.mxu0 %vm5408_vm0, %v5407_v0 }
0x180c   :  { %v3023_v11 = vpop.trf.xlu1 }
0x180d   :  { %4896 = vmatmul.mubr.msk.f32.vlgmr.msra.gmra.mrb[32].mxu1 %vm259_vm1, %v3023_v11 }
0x180e   :  { %5094 = vmatpush3.bf16.msra.mxu1 %v5093_v10  ;;  %4912 = vmatprep.mubr.msk.f32.mxu1 %vm5408_vm0, %v5407_v0 }
0x180f   :  { %5095 = vmatprep.subr.bf16.mxu1 %v5409_v1 }
0x1811   :  { %4913 = vmatmul.mubr.msk.f32.vlgmr.msra.gmra.mrb[34].mxu1 %vm333_vm2, %v3284_v13 }
0x1812   :  { %4919 = vmatprep.mubr.msk.f32.mxu1 %vm5408_vm0, %v5407_v0  ;;  %5097 = vmatpush3.bf16.msra.mxu1 %v5096_v17 }
0x1813   :  { %5098 = vmatprep.subr.bf16.mxu1 %v5409_v1 }
0x18a9   :  { %v2997_v20 = vpop.f32.mrb[28].mxu0 }
0x18aa   :  { %3002 = vrot.lane.b32.xlu0 %v2997_v20, %s5416_s10  ;;  %v4892_v14 = vpop.f32.mrb[29].mxu0 }
0x18e0   :  { %v3112_v21 = vpop.f32.mrb[32].mxu1 }
0x18e1   :  { %v3116_v22 = vmul.f32 %v3112_v21, %v5886_v42  ;;  %v4897_v23 = vpop.f32.mrb[33].mxu1 }
0x18e3   :  { %4899 = vmatpush3.msra.mxu0 %v3116_v22 }
0x18e4   :  { %v3354_v26 = vpop.f32.mrb[34].mxu1  ;;  %4903 = vmatprep.subr.mxu0 %v5407_v0 }
0x18e5   :  { %v3358_v31 = vmul.f32 0.999995, %v3354_v26  ;;  %v4914_v45 = vpop.f32.mrb[35].mxu1 }
0x18e7   :  { %4920 = vmatmul.mubr.msk.f32.vlgmr.msra.gmra.mrb[36].mxu1 %vm333_vm2, %v3358_v31 }
0x18e8   :  { %5100 = vmatpush3.bf16.msra.mxu1 %v5099_v51  ;;  %4931 = vmatprep.mubr.msk.f32.mxu1 %vm5408_vm0, %v5407_v0 }
0x18e9   :  { %4941 = vmatprep.subr.mxu1 %v5407_v0 }
0x18eb   :  { %4932 = vmatmul.mubr.msk.f32.vlgmr.msra.gmra.mrb[38].mxu1 %vm333_vm2, %v5874_v30 }
0x18ec   :  { %4943 = vmatprep.mubr.msk.f32.mxu1 %vm5408_vm0, %v5407_v0  ;;  %4942 = vmatpush3.msra.mxu1 %v256_v49 }
0x18ed   :  { %5104 = vmatprep.subr.bf16.mxu1 %v5409_v1 }
0x191c   :  { %v3003_v42 = vpop.permute.xlu0 %3002 }
0x191d   :  { %5215 = vrcp.f32 %v3003_v42 }
0x1927   :  { %v5216_v29 = vpop.eup %5215 }
0x1928   :  { %v3006_v33 = vmul.f32 %v5216_v29, %v5931_v43 }
0x192a   :  { %3118 = vrot.lane.b32.xlu0 %v3006_v33, %s5415_s4 }
0x199c   :  { %v3119_v34 = vpop.permute.xlu0 %3118 }
0x199d   :  { %4901 = vmatmul.mubr.msk.f32.vlgmr.msra.gmra.mrb[30].mxu0 %vm259_vm1, %v3119_v34 }
0x199e   :  { %4904 = vmatpush3.msra.mxu0 %v5917_v19  ;;  %4905 = vmatprep.mubr.msk.f32.mxu0 %vm5408_vm0, %v5407_v0  ;;  %v5102_v19 = vpack.c.bf16 %v255_v44, %v254_v41 }
0x199f   :  { %4922 = vmatprep.subr.mxu0 %v5407_v0 }
0x19ba   :  { %v3428_v35 = vpop.f32.mrb[36].mxu1 }
0x19bb   :  { %v4921_v37 = vpop.f32.mrb[37].mxu1  ;;  %v5982_v47 = vmul.f32 0.999995, %v3428_v35 }
0x19be   :  { %v3572_v38 = vpop.f32.mrb[38].mxu1 }
0x19bf   :  { %v4933_v36 = vpop.f32.mrb[39].mxu1  ;;  %v3576_v48 = vmul.f32 0.999995, %v3572_v38 }
0x1a70   :  { %v3188_v43 = vpop.f32.mrb[30].mxu0 }
0x1a71   :  { %v4902_v46 = vpop.f32.mrb[31].mxu0  ;;  %4906 = vmatmul.mubr.msk.f32.vlgmr.msra.gmra.mrb[26].mxu0 %vm259_vm1, %v3188_v43 }
0x1a72   :  { %4923 = vmatpush3.msra.mxu0 %v257_v39  ;;  %4924 = vmatprep.mubr.msk.f32.mxu0 %vm5408_vm0, %v5407_v0  ;;  %v202_v46 = vld [vmem:[%s6119_s21] sm:$0xff] }
0x1a73   :  { %5101 = vmatprep.subr.bf16.mxu0 %v5409_v1 }
0x1a75   :  { %4925 = vmatmul.mubr.msk.f32.vlgmr.msra.gmra.mrb[32].mxu0 %vm259_vm1, %v5982_v47 }
0x1a76   :  { %5103 = vmatpush3.bf16.msra.mxu0 %v5102_v19  ;;  %4938 = vmatprep.mubr.msk.f32.mxu0 %vm5408_vm0, %v5407_v0 }
0x1a77   :  { %4946 = vmatprep.subr.mxu0 %v5407_v0 }
0x1a79   :  { %4939 = vmatmul.mubr.msk.f32.vlgmr.msra.gmra.mrb[34].mxu0 %vm333_vm2, %v3576_v48 }
0x1a7a   :  { %4948 = vmatprep.mubr.msk.f32.mxu0 %vm5408_vm0, %v5407_v0  ;;  %4947 = vmatpush3.msra.mxu0 %v258_v58 }
0x1a7b   :  { %5107 = vmatprep.subr.bf16.mxu0 %v5409_v1 }
0x1b44   :  { %v5995_v50 = vpop.f32.mrb[26].mxu0 }
0x1b45   :  { %v4907_v52 = vpop.f32.mrb[27].mxu0 }
0x1b48   :  { %v3502_v53 = vpop.f32.mrb[32].mxu0 }
0x1b49   :  { %v4926_v54 = vpop.f32.mrb[33].mxu0  ;;  %v3654_v59 = vrot.slane %v3502_v53, %v5821_v8  ;;  %v3975_v15 = vrot.slane %v3502_v53, %v5837_v32 }
0x1b4a   :  { %v3825_v54 = vrot.slane %v5982_v47, %v5821_v8 }
0x1b4c   :  { %v3646_v55 = vpop.f32.mrb[34].mxu0 }
0x1b4d   :  { %v5997_v56 = vmul.f32 0.999995, %v3646_v55  ;;  %v4940_v57 = vpop.f32.mrb[35].mxu0  ;;  %v4146_v55 = vrot.slane %v5982_v47, %v5837_v32  ;;  %v205_v32 = vld [vmem:[%s6121_s28] sm:$0xff] }
0x1b4f   :  { %4944 = vmatmul.mubr.msk.f32.vlgmr.msra.gmra.mrb[40].mxu1 %vm259_vm1, %v5997_v56 }
0x1b50   :  { %5106 = vmatpush3.bf16.msra.mxu1 %v5099_v51  ;;  %4955 = vmatprep.mubr.msk.f32.mxu1 %vm5408_vm0, %v5407_v0 }
0x1b51   :  { %4965 = vmatprep.subr.mxu1 %v5407_v0 }
0x1b53   :  { %4956 = vmatmul.mubr.msk.f32.vlgmr.msra.gmra.mrb[42].mxu1 %vm333_vm2, %v5910_v18 }
0x1b54   :  { %4966 = vmatpush3.msra.mxu1 %v256_v49  ;;  %4967 = vmatprep.mubr.msk.f32.mxu1 %vm5408_vm0, %v5407_v0  ;;  %v4475_v49 = vld [vmem:[%s6120_s26] ss:$0 sm:$0xff] }
0x1b55   :  { %5110 = vmatprep.subr.bf16.mxu1 %v5409_v1  ;;  %v5123_v52 = vadd.f32 %v4475_v49, %v5910_v18 }
0x1b57   :  { %v5124_v53 = vadd.f32 %v5123_v52, %v4475_v49 }
0x1c22   :  { %v3724_v60 = vpop.f32.mrb[40].mxu1 }
0x1c23   :  { %v3725_v61 = vadd.f32 %v3724_v60, %v3654_v59  ;;  %v4945_v27 = vpop.f32.mrb[41].mxu1 }
0x1c25   :  { %v3728_v28 = vmul.f32 0.999995, %v3725_v61 }
0x1c26   :  { %v3893_v62 = vpop.f32.mrb[42].mxu1 }
0x1c27   :  { %4949 = vmatmul.mubr.msk.f32.vlgmr.msra.gmra.mrb[36].mxu0 %vm259_vm1, %v3728_v28  ;;  %v3897_v2 = vmul.f32 0.999995, %v3893_v62  ;;  %v4957_v3 = vpop.f32.mrb[43].mxu1 }
0x1c28   :  { %5109 = vmatpush3.bf16.msra.mxu0 %v5102_v19  ;;  %4962 = vmatprep.mubr.msk.f32.mxu0 %vm5408_vm0, %v5407_v0  ;;  %v203_v19 = vld [vmem:[%s6119_s21 + $0x8] sm:$0xff]  ;;  %v207_v3 = vld [vmem:[%s6121_s28 + $0x10] sm:$0xff] }
0x1c29   :  { %4970 = vmatprep.subr.mxu0 %v5407_v0  ;;  %v5111_v48 = vpack.c.bf16 %v203_v19, %v202_v46 }
0x1c2b   :  { %4963 = vmatmul.mubr.msk.f32.vlgmr.msra.gmra.mrb[38].mxu0 %vm333_vm2, %v3897_v2 }
0x1c2c   :  { %4971 = vmatpush3.msra.mxu0 %v258_v58  ;;  %4972 = vmatprep.mubr.msk.f32.mxu0 %vm5408_vm0, %v5407_v0 }
0x1c2d   :  { %5113 = vmatprep.subr.bf16.mxu0 %v5409_v1 }
0x1cfa   :  { %v3798_v4 = vpop.f32.mrb[36].mxu0 }
0x1cfb   :  { %v4489_v5 = vadd.f32 -1.0, %v3798_v4  ;;  %v4950_v6 = vpop.f32.mrb[37].mxu0  ;;  %v3802_v21 = vadd.f32 %v5843_v40, %v3798_v4 }
0x1cfd   :  { %v3808_v7 = vand.u32 2147483647, %v4489_v5  ;;  %v3804_v22 = vand.u32 2147483647, %v3802_v21  ;;  %v4495_v5 = vld [vmem:[%s6122_s27] ss:$0 sm:$0xff] }
0x1cfe   :  { %v3967_v9 = vpop.f32.mrb[38].mxu0 }
0x1cff   :  { %v3809_v10 = vmul.f32 0.5, %v3808_v7  ;;  %v3971_v11 = vmul.f32 0.999995, %v3967_v9  ;;  %v4964_v12 = vpop.f32.mrb[39].mxu0  ;;  %v3805_v26 = vmul.f32 0.5, %v3804_v22 }
0x1d00   :  { %v4497_v12 = vld [vmem:[%s6123_s1] ss:$0 sm:$0xff] }
0x1d01   :  { %v3810_v63 = vsub.f32 1.0, %v3809_v10  ;;  %4968 = vmatmul.mubr.msk.f32.vlgmr.msra.gmra.mrb[44].mxu1 %vm259_vm1, %v3971_v11  ;;  %v3806_v45 = vsub.f32 1.0, %v3805_v26  ;;  %v4149_v43 = vadd.f32 %v3971_v11, %v5997_v56  ;;  %v5125_v56 = vadd.f32 %v5124_v53, %v5874_v30  ;;  %v206_v30 = vld [vmem:[%s6121_s28 + $0x8] sm:$0xff] }
0x1d02   :  { %4979 = vmatprep.mubr.msk.f32.mxu1 %vm5408_vm0, %v5407_v0  ;;  %5112 = vmatpush3.bf16.msra.mxu1 %v5111_v48  ;;  %v5114_v47 = vpack.c.bf16 %v206_v30, %v205_v32 }
0x1d03   :  { %v3811_v13 = vmax.f32 %v3810_v63, 0.0  ;;  %v3807_v34 = vmax.f32 %v3806_v45, 0.0  ;;  %v5126_v60 = vadd.f32 %v5125_v56, %v5995_v50  ;;  %v208_v50 = vld [vmem:[%s6121_s28 + $0x18] sm:$0xff] }
0x1d04   :  { %v5117_v4 = vpack.c.bf16 %v208_v50, %v207_v3 }
0x1d05   :  { %3813 = vrot.lane.b32.xlu0 %v3811_v13, %s5413_s19  ;;  %v3267_v28 = vmul.f32 0.5, %v5126_v60 }
0x1d77   :  { %v3814_v33 = vpop.permute.xlu0 %3813 }
0x1d78   :  { %v3816_v35 = vmul.f32 %v3814_v33, %v3807_v34 }
0x1dd4   :  { %v4045_v16 = vpop.f32.mrb[44].mxu1 }
0x1dd5   :  { %v4046_v17 = vadd.f32 %v4045_v16, %v3975_v15  ;;  %v4969_v20 = vpop.f32.mrb[45].mxu1 }
0x1dd7   :  { %v4049_v14 = vmul.f32 0.999995, %v4046_v17 }
0x1dd9   :  { %4973 = vmatmul.mubr.msk.f32.vlgmr.msra.gmra.mrb[40].mxu0 %vm259_vm1, %v4049_v14 }
0x1dda   :  { %4990 = vmatprep.mubr.msk.f32.mxu0 %vm5408_vm0, %v5407_v0  ;;  %5115 = vmatpush3.bf16.msra.mxu0 %v5114_v47 }
0x1ddb   :  { %5116 = vmatprep.subr.bf16.mxu0 %v5409_v1 }
0x1dde   :  { %5118 = vmatpush3.bf16.msra.mxu0 %v5117_v4 }
0x1eac   :  { %v4119_v23 = vpop.f32.mrb[40].mxu0 }
0x1ead   :  { %v4494_v24 = vadd.f32 -1.0, %v4119_v23  ;;  %v4974_v25 = vpop.f32.mrb[41].mxu0  ;;  %v4123_v0 = vadd.f32 %v5843_v40, %v4119_v23 }
0x1eaf   :  { %v4129_v51 = vand.u32 2147483647, %v4494_v24  ;;  %v4125_v37 = vand.u32 2147483647, %v4123_v0 }
0x1eb1   :  { %v4130_v31 = vmul.f32 0.5, %v4129_v51  ;;  %v4126_v38 = vmul.f32 0.5, %v4125_v37 }
0x1eb3   :  { %v4131_v42 = vsub.f32 1.0, %v4130_v31  ;;  %v4127_v36 = vsub.f32 1.0, %v4126_v38 }
0x1eb5   :  { %v4132_v29 = vmax.f32 %v4131_v42, 0.0  ;;  %v4128_v39 = vmax.f32 %v4127_v36, 0.0 }
0x1eb7   :  { %4134 = vrot.lane.b32.xlu0 %v4132_v29, %s5413_s19 }
0x1ebb   :  { %3819 = vperm.xlu0 %5184, %v3816_v35  }
0x1f29   :  { %v4135_v41 = vpop.permute.xlu0 %4134 }
0x1f2a   :  { %v4137_v44 = vmul.f32 %v4135_v41, %v4128_v39 }
0x1f2c   :  { %4140 = vperm.xlu0 %5184, %v4137_v44  }
0x1f30   :  { %4151 = vrot.lane.b32.xlu0 %v4149_v43, %s5416_s10 }
0x1f3a   :  { %v3820_v40 = vpop.permute.xlu0 %3819 }
0x1f3b   :  { %v3826_v58 = vmul.f32 %v3825_v54, %v3820_v40 }
0x1fab   :  { %v4141_v57 = vpop.permute.xlu0 %4140 }
0x1fac   :  { %v4147_v59 = vmul.f32 %v4146_v55, %v4141_v57 }
0x1fae   :  { %v4148_v18 = vadd.f32 %v4147_v59, %v3826_v58 }
0x1faf   :  { %v4152_v61 = vpop.permute.xlu0 %4151 }
0x1fb0   :  { %v4154_v27 = vsel %vm259_vm1, %v4148_v18, %v4152_v61 }
0x1fb1   :  { %v4155_v8 = vmul.f32 0.5, %v4154_v27 }
0x1fb3   :  { %v4156_v62 = vadd.f32 %v4155_v8, %v3267_v28 }
0x1fb5   :  { %v4157_v2 = vmul.f32 0.5, %v4156_v62 }
0x1fb7   :  { %4980 = vmatmul.mubr.msk.f32.vlgmr.msra.gmra.mrb[46].mxu1 %vm333_vm2, %v4157_v2 }
0x208a   :  { %v4233_v6 = vpop.f32.mrb[46].mxu1 }
0x208b   :  { %v4234_v7 = vadd.f32 %v4495_v5, %v4233_v6  ;;  %v4981_v9 = vpop.f32.mrb[47].mxu1 }
0x208d   :  { %v4237_v10 = vmax.f32 %v4234_v7, 0.0 }
0x208f   :  { %v4238_v11 = vmul.f32 0.999995, %v4237_v10 }
0x2091   :  { %4991 = vmatmul.mubr.msk.f32.vlgmr.msra.gmra.mrb[42].mxu0 %vm495_vm3, %v4238_v11 }
0x2164   :  { %v4314_v63 = vpop.f32.mrb[42].mxu0 }
0x2165   :  { %v4315_v13 = vadd.f32 %v4497_v12, %v4314_v63  ;;  %v4992_v15 = vpop.f32.mrb[43].mxu0 }
0x2167   :  { %v4318_v16 = vsub.f32 0.0, %v4315_v13  ;;  %v4335_v17 = vand.u32 2147483647, %v4315_v13  ;;  %v4325_v20 = vmul.f32 1.442695, %v4315_v13 }
0x2169   :  { %v4319_v1 = vmul.f32 1.442695, %v4318_v16  ;;  %v4336_v14 = vsub.f32 0.0, %v4335_v17  ;;  %5217 = vpow2.f32 %v4325_v20 }
0x216b   :  { %5219 = vpow2.f32 %v4319_v1  ;;  %v4337_v21 = vmul.f32 1.442695, %v4336_v14 }
0x216d   :  { %5221 = vpow2.f32 %v4337_v21 }
0x2173   :  { %v5218_v22 = vpop.eup %5217 }
0x2174   :  { %v4327_v23 = vmax.f32 %v5218_v22, 1e-05 }
0x2175   :  { %v5220_v24 = vpop.eup %5219 }
0x2176   :  { %v4321_v25 = vadd.f32 1.0, %v5220_v24  ;;  %v4328_v26 = vmin.f32 %v4327_v23, 1000000.0 }
0x2177   :  { %v5222_v51 = vpop.eup %5221 }
0x2178   :  { %5223 = vrcp.f32 %v4321_v25  ;;  %4330 = vrot.lane.b32.xlu0 %v4328_v26, %s5411_s9  ;;  %v4339_v31 = vadd.f32 1.0, %v5222_v51  ;;  %v4342_v45 = vmul.f32 -0.5, %v5222_v51  ;;  %v4345_v33 = vand.u32 2147483647, %v5222_v51 }
0x217a   :  { %5225 = vlog2.f32 %v4339_v31  ;;  %v4343_v42 = vadd.f32 1.0, %v4342_v45 }
0x2182   :  { %v5224_v29 = vpop.eup %5223 }
0x2183   :  { %4324 = vst.msk [vmem:[#allocation8] sm:$0xff] %vm333_vm2, %v5224_v29 }
0x2184   :  { %v5226_v34 = vpop.eup %5225 }
0x2185   :  { %5304 = shalt.err (!%p5301_p0)
}
0x2186   :  { %s5305_s9 = scalar_lea.hbm %s5603_s8, 128 }
0x2187   :  { %p5306_p1 = scmp.ne.s32.totalorder %s5603_s8, %s5305_s9  ;;  %p5309_p2 = scmp.lt.u32.totalorder %s5305_s9, %s5603_s8 }
0x2189   :  { %p5311_p3 = pnand %p5309_p2, %p5306_p1 }
0x218b   :  { %5314 = shalt.err (!%p5311_p3)
}
0x218c   :  { %4365 = dma.vmem_to_hbm [thread:$0]  %s4363_s7, 128, %s5603_s8, [#allocation4]   ;;  %v4341_v35 = vmul.f32 0.6931472, %v5226_v34  ;;  %v4344_v0 = vmul.f32 %v5222_v51, %v4343_v42  ;;  %v4334_v37 = vmax.f32 %v4315_v13, 0.0 }
0x218d   :  { %vm4346_vm7 = vcmp.lt.f32.partialorder %v4345_v33, 0.0004427343  ;;  %s5418_s17 = smov [#allocation9]  }
0x218e   :  { %v4347_v38 = vsel %vm4346_vm7, %v4344_v0, %v4341_v35  ;;  %s4372_s25 = sshll.u32 %s5418_s17, 4  ;;  %s4373_s25 = int_to_ptr.vmem [resolvable:$true] %s4372_s25 }
0x218f   :  { %v4348_v36 = vadd.f32 %v4347_v38, %v4334_v37  ;;  %s5315_s29 = scalar_lea.vmem %s4373_s25, 128  ;;  %p5320_p5 = scmp.lt.s32.totalorder %s4373_s25, %s4373_s25 }
0x2190   :  { %p5316_p4 = scmp.ne.s32.totalorder %s4373_s25, %s5315_s29  ;;  %p5321_p6 = scmp.lt.s32.totalorder %s5315_s29, %s5315_s29 }
0x2191   :  { %v4349_v39 = vmax.f32 %v4348_v36, 0.0001 }
0x2192   :  { %p5322_p7 = por %p5321_p6, %p5320_p5 }
0x2193   :  { %v4350_v41 = vmin.f32 %v4349_v39, 10000.0 }
0x2194   :  { %p5323_p8 = pnand %p5322_p7, %p5316_p4 }
0x2195   :  { %4352 = vrot.lane.b32.xlu0 %v4350_v41, %s5410_s5 }
0x21ea   :  { %v4331_v44 = vpop.permute.xlu0 %4330 }
0x21eb   :  { %4333 = vst.msk [vmem:[#allocation9] sm:$0xff] %vm333_vm2, %v4331_v44 }
0x21ec   :  { %5326 = shalt.err (!%p5323_p8)
}
0x21ed   :  { %s5327_s8 = scalar_lea.hbm %s5608_s3, 128 }
0x21ee   :  { %p5328_p9 = scmp.ne.s32.totalorder %s5608_s3, %s5327_s8  ;;  %p5331_p10 = scmp.lt.u32.totalorder %s5327_s8, %s5608_s3 }
0x21f0   :  { %p5333_p11 = pnand %p5331_p10, %p5328_p9 }
0x21f2   :  { %5336 = shalt.err (!%p5333_p11)
}
0x21f3   :  { %4375 = dma.vmem_to_hbm [thread:$0]  %s4373_s25, 128, %s5608_s3, [#allocation10]  }
0x21f4   :  { %s5419_s5 = smov [#allocation11]  }
0x21f5   :  { %s4382_s14 = sshll.u32 %s5419_s5, 4  ;;  %s4383_s14 = int_to_ptr.vmem [resolvable:$true] %s4382_s14 }
0x21f6   :  { %s5337_s19 = scalar_lea.vmem %s4383_s14, 128  ;;  %p5342_p13 = scmp.lt.s32.totalorder %s4383_s14, %s4383_s14 }
0x21f7   :  { %p5338_p12 = scmp.ne.s32.totalorder %s4383_s14, %s5337_s19  ;;  %p5343_p0 = scmp.lt.s32.totalorder %s5337_s19, %s5337_s19 }
0x21f9   :  { %p5344_p1 = por %p5343_p0, %p5342_p13 }
0x21fb   :  { %p5345_p2 = pnand %p5344_p1, %p5338_p12 }
0x2207   :  { %v4353_v43 = vpop.permute.xlu0 %4352 }
0x2208   :  { %4355 = vst.msk [vmem:[#allocation11] sm:$0xff] %vm333_vm2, %v4353_v43 }
0x2209   :  { %5348 = shalt.err (!%p5345_p2)
}
0x220a   :  { %s5349_s30 = scalar_lea.hbm %s5613_s24, 128 }
0x220b   :  { %p5350_p3 = scmp.ne.s32.totalorder %s5613_s24, %s5349_s30  ;;  %p5353_p4 = scmp.lt.u32.totalorder %s5349_s30, %s5613_s24 }
0x220d   :  { %p5355_p5 = pnand %p5353_p4, %p5350_p3 }
0x220f   :  { %5358 = shalt.err (!%p5355_p5)
}
0x2210   :  { %4385 = dma.vmem_to_hbm [thread:$0]  %s4383_s14, 128, %s5613_s24, [#allocation10]  }
0x2211   :  { %5363 = dma.done.wait [#allocation4], 128  }
0x2212   :  { %5364 = vsyncadd [#allocation4], 4294967168 }
0x2213   :  { %5365 = dma.done.wait [#allocation10], 256  }
0x2214   :  { %5366 = vsyncadd [#allocation10], 4294967040 }
0x2215   :  { %4395 = vsyncpa [#allocation3], 1 }
0x2216   :  { %4396 = vsyncpa [#allocation6], 1 }
0x2217   :  { %4397 = vsyncpa [#allocation4], 1 }
0x2218   :  { %4398 = vsyncpa [#allocation10], 1 }

</bundles_post_ra>
